<compile_context>
chip_gen: v7x
topology: tpu7x:2x2x1
jax: 0.10.0
libtpu: 0.0.40
codegen_flags: <defaults>
</compile_context>

<pallas_src>
import functools
import math

import jax
import jax.numpy as jnp
from jax import lax
from jax.experimental import pallas as pl
from jax.experimental.pallas import tpu as pltpu


# ----------------------------------------------------------------------------
# Layer configuration (ConvTranspose3d stack of the PyTorch module).
# ----------------------------------------------------------------------------
_LAYERS = (
    dict(cin=512, cout=256, d_in=4,  cout_blk=256),
    dict(cin=256, cout=128, d_in=8,  cout_blk=512),
    dict(cin=128, cout=64,  d_in=16, cout_blk=512),
    dict(cin=64,  cout=1,   d_in=32, cout_blk=8),
)

# (padded-input offset, output parity) -> kernel tap (None = unused)
# polyphase decomposition of ConvTranspose(k=4, s=2, p=1), per spatial axis.
_TAP_FOR = {(0, 0): 3, (1, 0): 1, (2, 0): None,
            (0, 1): None, (1, 1): 2, (2, 1): 0}


# ----------------------------------------------------------------------------
# Pallas kernel 1: Linear + bias + ReLU (bf16 operands, f32 accumulation).
# ----------------------------------------------------------------------------
def _linear_kernel(x_ref, w_ref, b_ref, o_ref):
    y = jnp.dot(x_ref[...], w_ref[...], preferred_element_type=jnp.float32)
    y = jnp.maximum(y + b_ref[...], 0.0)
    o_ref[...] = y.astype(o_ref.dtype)


def linear_relu(x, w, b, *, tn=8192):
    """x: [M, K] bf16, w: [K, N] bf16, b: [1, N] f32 -> bf16 [M, N]."""
    M, K = x.shape
    N = w.shape[1]
    grid = (N // tn,)
    return pl.pallas_call(
        _linear_kernel,
        out_shape=jax.ShapeDtypeStruct((M, N), jnp.bfloat16),
        grid_spec=pltpu.PrefetchScalarGridSpec(
            num_scalar_prefetch=0,
            grid=grid,
            in_specs=[pl.BlockSpec((M, K), lambda j: (0, 0)),
                      pl.BlockSpec((K, tn), lambda j: (0, j)),
                      pl.BlockSpec((1, tn), lambda j: (0, j))],
            out_specs=pl.BlockSpec((M, tn), lambda j: (0, j)),
        ),
        compiler_params=pltpu.CompilerParams(
            dimension_semantics=("parallel",)),
    )(x, w, b)


# ----------------------------------------------------------------------------
# Pallas kernel 2: fused ConvTranspose3d layer (polyphase GEMM) + bias
#                  + optional sigmoid + per-step BatchNorm partial statistics.
#
# Grid step (cb, n, jd): reads padded d-slices jd, jd+1, jd+2 of the NDHWC
# input, builds the 9 (oh, ow)-shifted views per slice in VMEM, and does one
# [H*W, 9*Cin] @ [9*Cin, cout_blk] GEMM per d-offset, accumulating the
# parity-major output block [H*W, cout_blk] (columns ordered (pd, ph, pw, c)).
# ----------------------------------------------------------------------------
def _conv_kernel(s0_ref, s1_ref, s2_ref, w_ref, b_ref, y_ref, st_ref, *,
                 H, W, act):
    acc = None
    for od, s_ref in enumerate((s0_ref, s1_ref, s2_ref)):
        s = s_ref[0, 0]                       # [Hp, Wp, C] bf16
        views = []
        for oh in range(3):
            for ow in range(3):
                v = s[oh:oh + H, ow:ow + W, :]
                views.append(v.reshape(H * W, v.shape[-1]))
        x = jnp.concatenate(views, axis=1)    # [H*W, 9*C] bf16 (VMEM only)
        p = jnp.dot(x, w_ref[od], preferred_element_type=jnp.float32)
        acc = p if acc is None else acc + p
    y = acc + b_ref[...]                      # [H*W, blk] f32 (conv + bias)

    # BatchNorm partial statistics of the pre-activation conv output.
    ssum = jnp.sum(y, axis=0, keepdims=True)
    ssq = jnp.sum(y * y, axis=0, keepdims=True)
    st_ref[0, 0] = jnp.concatenate([ssum, ssq], axis=0)

    if act == "sigmoid":
        y = jax.nn.sigmoid(y)
    y_ref[0, 0] = y.astype(y_ref.dtype)


def conv_transpose_layer(xp, wpk, bias8, *, H, W, act, cout_blk,
                         out_dtype=jnp.bfloat16):
    """xp: [N, D+2, H+2, W+2, Cin] bf16 (padded NDHWC)
       wpk: [3, 9*Cin, 8*Cout] bf16 packed polyphase weights
       bias8: [1, 8*Cout] f32
       returns (y [N, D, H*W, 8*Cout], stats [N, D, 2, 8*Cout])."""
    N, Dp, Hp, Wp, C = xp.shape
    D = Dp - 2
    NC8 = wpk.shape[2]
    n_cb = NC8 // cout_blk
    grid = (n_cb, N, D)
    kernel = functools.partial(_conv_kernel, H=H, W=W, act=act)

    def slice_spec(od):
        return pl.BlockSpec((1, 1, Hp, Wp, C),
                            lambda cb, n, jd, od=od: (n, jd + od, 0, 0, 0))

    return pl.pallas_call(
        kernel,
        out_shape=(jax.ShapeDtypeStruct((N, D, H * W, NC8), out_dtype),
                   jax.ShapeDtypeStruct((N, D, 2, NC8), jnp.float32)),
        grid_spec=pltpu.PrefetchScalarGridSpec(
            num_scalar_prefetch=0,
            grid=grid,
            in_specs=[
                slice_spec(0), slice_spec(1), slice_spec(2),
                pl.BlockSpec((3, 9 * C, cout_blk),
                             lambda cb, n, jd: (0, 0, cb)),
                pl.BlockSpec((1, cout_blk), lambda cb, n, jd: (0, cb)),
            ],
            out_specs=(
                pl.BlockSpec((1, 1, H * W, cout_blk),
                             lambda cb, n, jd: (n, jd, 0, cb)),
                pl.BlockSpec((1, 1, 2, cout_blk),
                             lambda cb, n, jd: (n, jd, 0, cb)),
            ),
        ),
        compiler_params=pltpu.CompilerParams(
            dimension_semantics=("parallel", "parallel", "parallel"),
            vmem_limit_bytes=48 * 1024 * 1024),
    )(xp, xp, xp, wpk, bias8)


# ----------------------------------------------------------------------------
# Pallas kernel 3: folded BatchNorm affine + ReLU on the parity-major layout.
# ----------------------------------------------------------------------------
def _affine_relu_kernel(x_ref, scale_ref, shift_ref, o_ref):
    y = x_ref[...].astype(jnp.float32) * scale_ref[...] + shift_ref[...]
    o_ref[...] = jnp.maximum(y, 0.0).astype(o_ref.dtype)


def affine_relu(x2d, scale, shift, *, tile_rows):
    """x2d: [M, 8*Cout] bf16, scale/shift: [1, 8*Cout] f32 -> bf16 [M, 8*Cout]."""
    M, Cc = x2d.shape
    grid = (M // tile_rows,)
    return pl.pallas_call(
        _affine_relu_kernel,
        out_shape=jax.ShapeDtypeStruct((M, Cc), jnp.bfloat16),
        grid_spec=pltpu.PrefetchScalarGridSpec(
            num_scalar_prefetch=0,
            grid=grid,
            in_specs=[pl.BlockSpec((tile_rows, Cc), lambda i: (i, 0)),
                      pl.BlockSpec((1, Cc), lambda i: (0, 0)),
                      pl.BlockSpec((1, Cc), lambda i: (0, 0))],
            out_specs=pl.BlockSpec((tile_rows, Cc), lambda i: (i, 0)),
        ),
        compiler_params=pltpu.CompilerParams(
            dimension_semantics=("parallel",)),
    )(x2d, scale, shift)


# ----------------------------------------------------------------------------
# Parameter init (matches the PyTorch module's shapes) and packing.
# ----------------------------------------------------------------------------
def init_generator_params(key, latent_dim):
    params = {}
    keys = jax.random.split(key, 2 + 2 * len(_LAYERS))
    params["w_lin"] = (jax.random.normal(keys[0], (latent_dim, 512 * 4 * 4 * 4),
                                         jnp.float32) / math.sqrt(latent_dim))
    params["b_lin"] = 0.01 * jax.random.normal(keys[1], (1, 512 * 4 * 4 * 4),
                                               jnp.float32)
    for li, cfg in enumerate(_LAYERS):
        cin, cout = cfg["cin"], cfg["cout"]
        kw, kb = keys[2 + 2 * li], keys[3 + 2 * li]
        params[f"w{li}"] = 0.05 * jax.random.normal(kw, (cin, cout, 4, 4, 4),
                                                    jnp.float32)
        params[f"b{li}"] = 0.01 * jax.random.normal(kb, (cout,), jnp.float32)
        if li < len(_LAYERS) - 1:
            # nn.BatchNorm3d default init: weight (gamma) = 1, bias (beta) = 0.
            params[f"bn_gamma{li}"] = jnp.ones((1, cout), jnp.float32)
            params[f"bn_beta{li}"] = jnp.zeros((1, cout), jnp.float32)
    return params


def _pack_conv_weight(w):
    """w: [Cin, Cout, 4, 4, 4] (PyTorch ConvTranspose3d layout)
       -> packed polyphase matrix [3, 9*Cin, 8*Cout] bf16.
       Rows ordered (oh, ow, cin); cols ordered (pd, ph, pw, cout)."""
    cin, cout = w.shape[0], w.shape[1]
    zeros = jnp.zeros((cin, cout), w.dtype)
    d_blocks = []
    for od in range(3):
        row_blocks = []
        for oh in range(3):
            for ow in range(3):
                col_blocks = []
                for pd in range(2):
                    kd = _TAP_FOR[(od, pd)]
                    for ph in range(2):
                        kh = _TAP_FOR[(oh, ph)]
                        for pw in range(2):
                            kw = _TAP_FOR[(ow, pw)]
                            if kd is None or kh is None or kw is None:
                                col_blocks.append(zeros)
                            else:
                                col_blocks.append(w[:, :, kd, kh, kw])
                row_blocks.append(jnp.concatenate(col_blocks, axis=1))
        d_blocks.append(jnp.concatenate(row_blocks, axis=0))
    return jnp.stack(d_blocks, axis=0).astype(jnp.bfloat16)


def prepare_generator_params(params):
    prep = {"w_lin": params["w_lin"].astype(jnp.bfloat16),
            "b_lin": params["b_lin"].astype(jnp.float32)}
    for li, cfg in enumerate(_LAYERS):
        prep[f"wpk{li}"] = _pack_conv_weight(params[f"w{li}"])
        prep[f"bias8_{li}"] = jnp.tile(params[f"b{li}"].astype(jnp.float32),
                                       8)[None, :]
        if li < len(_LAYERS) - 1:
            prep[f"gamma{li}"] = params[f"bn_gamma{li}"].reshape(-1).astype(jnp.float32)
            prep[f"beta{li}"] = params[f"bn_beta{li}"].reshape(-1).astype(jnp.float32)
    return prep


# ----------------------------------------------------------------------------
# Generator forward pass.
# ----------------------------------------------------------------------------
def generator_forward(prep, x):
    """x: [B, latent_dim] -> [B, 1, 64, 64, 64] (NCDHW, like the PyTorch module)."""
    B = x.shape[0]
    eps = 1e-5

    # self.latent: Linear + ReLU  (Pallas GEMM with fused bias + ReLU).
    h = linear_relu(x.astype(jnp.bfloat16), prep["w_lin"], prep["b_lin"])
    h = h.reshape(B, 512, 4, 4, 4)                 # view(-1, 512, 4, 4, 4)  NCDHW
    h = jnp.transpose(h, (0, 2, 3, 4, 1))          # NDHWC bf16

    out = None
    for li, cfg in enumerate(_LAYERS):
        d, cout = cfg["d_in"], cfg["cout"]
        last = li == len(_LAYERS) - 1
        hp = jnp.pad(h, ((0, 0), (1, 1), (1, 1), (1, 1), (0, 0)))
        y, st = conv_transpose_layer(
            hp, prep[f"wpk{li}"], prep[f"bias8_{li}"],
            H=d, W=d, act="sigmoid" if last else None,
            cout_blk=cfg["cout_blk"],
            out_dtype=jnp.float32 if last else jnp.bfloat16)
        # y: [B, d, d*d, 8*cout] parity-major, st: [B, d, 2, 8*cout] partial stats.

        if not last:
            cnt = B * d * d * d * 8
            ssum = st[:, :, 0, :].reshape(-1, 8, cout).sum(axis=(0, 1))
            ssq = st[:, :, 1, :].reshape(-1, 8, cout).sum(axis=(0, 1))
            mean = ssum / cnt
            var = jnp.maximum(ssq / cnt - mean * mean, 0.0)   # clamp (review)
            scale_c = prep[f"gamma{li}"] * lax.rsqrt(var + eps)
            shift_c = prep[f"beta{li}"] - mean * scale_c
            scale8 = jnp.tile(scale_c, 8)[None, :]
            shift8 = jnp.tile(shift_c, 8)[None, :]

            y2 = y.reshape(-1, 8 * cout)
            y2 = affine_relu(y2, scale8, shift8,
                             tile_rows=min(y2.shape[0], 4096))
            # Parity de-interleave (bf16) -> NDHWC input of the next layer.
            y6 = y2.reshape(B, d, d, d, 2, 2, 2, cout)
            y6 = jnp.transpose(y6, (0, 1, 4, 2, 5, 3, 6, 7))
            h = y6.reshape(B, 2 * d, 2 * d, 2 * d, cout)
        else:
            y6 = y.reshape(B, d, d, d, 2, 2, 2).astype(jnp.float32)
            y6 = jnp.transpose(y6, (0, 1, 4, 2, 5, 3, 6))
            out = y6.reshape(B, 2 * d, 2 * d, 2 * d)[:, None]  # [B,1,64,64,64]
    return out


if __name__ == "__main__":
    latent_dim = 32
    batch = 2
    key = jax.random.PRNGKey(0)
    k_param, k_x = jax.random.split(key)
    params = init_generator_params(k_param, latent_dim)
    prep = prepare_generator_params(params)
    x = jax.random.normal(k_x, (batch, latent_dim), jnp.float32)

    # Self-check: fused Pallas polyphase transposed conv (layer 0) vs.
    # lax.conv_general_dilated on the same bf16-rounded operands.
    h = linear_relu(x.astype(jnp.bfloat16), prep["w_lin"], prep["b_lin"])
    h_ncdhw = h.reshape(batch, 512, 4, 4, 4)
    h_ndhwc = jnp.transpose(h_ncdhw, (0, 2, 3, 4, 1))
    hp = jnp.pad(h_ndhwc, ((0, 0), (1, 1), (1, 1), (1, 1), (0, 0)))
    y, _ = conv_transpose_layer(hp, prep["wpk0"], prep["bias8_0"],
                                H=4, W=4, act=None, cout_blk=256)
    y6 = y.reshape(batch, 4, 4, 4, 2, 2, 2, 256)
    mine = jnp.transpose(y6, (0, 1, 4, 2, 5, 3, 6, 7)).reshape(batch, 8, 8, 8, 256)
    mine = jnp.transpose(mine, (0, 4, 1, 2, 3)).astype(jnp.float32)

    lhs = jnp.transpose(h_ndhwc.astype(jnp.float32), (0, 4, 1, 2, 3))
    w0_bf = params["w0"].astype(jnp.bfloat16).astype(jnp.float32)
    rhs = jnp.transpose(jnp.flip(w0_bf, axis=(2, 3, 4)), (1, 0, 2, 3, 4))
    ref = lax.conv_general_dilated(
        lhs, rhs, window_strides=(1, 1, 1), padding=[(2, 2)] * 3,
        lhs_dilation=(2, 2, 2),
        dimension_numbers=("NCDHW", "OIDHW", "NCDHW"),
    ) + params["b0"].reshape(1, -1, 1, 1, 1)
    rel_err = float(jnp.max(jnp.abs(mine - ref)) / (jnp.max(jnp.abs(ref)) + 1e-6))
    assert rel_err < 3e-2, f"transposed-conv mismatch: rel err = {rel_err}"

    fwd = jax.jit(generator_forward)
    out = fwd(prep, x)
    out = jax.block_until_ready(out)
    assert out.shape == (batch, 1, 64, 64, 64)
    assert out.dtype == jnp.float32
    assert bool(jnp.isfinite(out).all())
    print("KERNEL_OK")
</pallas_src>

<mosaic_0001>
module attributes {stable_mosaic.version = 11 : i64} {
  func.func @_linear_kernel(%arg0: i32, %arg1: memref<2x32xbf16, #tpu.memory_space<vmem>>, %arg2: memref<32x8192xbf16, #tpu.memory_space<vmem>>, %arg3: memref<1x8192xf32, #tpu.memory_space<vmem>>, %arg4: memref<2x8192xbf16, #tpu.memory_space<vmem>>) attributes {dimension_semantics = [#tpu.dimension_semantics<parallel>], iteration_bounds = array<i64: 4>, scalar_prefetch = 0 : i64, scratch_operands = 0 : i64, tpu.core_type = #tpu.core_type<tc>, window_params = [{pipeline_mode = #tpu.pipeline_mode<synchronous>, transform_indices = @transform_0, window_bounds = array<i64: 2, 32>}, {transform_indices = @transform_1, window_bounds = array<i64: 32, 8192>}, {transform_indices = @transform_2, window_bounds = array<i64: 1, 8192>}, {transform_indices = @transform_3, window_bounds = array<i64: 2, 8192>}]} {
    %c0 = arith.constant 0 : index
    %c0_0 = arith.constant 0 : index
    %0 = vector.load %arg1[%c0, %c0_0] : memref<2x32xbf16, #tpu.memory_space<vmem>>, vector<2x32xbf16>
    %c0_1 = arith.constant 0 : index
    %c0_2 = arith.constant 0 : index
    %1 = vector.load %arg2[%c0_1, %c0_2] : memref<32x8192xbf16, #tpu.memory_space<vmem>>, vector<32x8192xbf16>
    %cst = arith.constant dense<0.000000e+00> : vector<2x8192xf32>
    %2 = tpu.matmul %0, %1, %cst {dimension_numbers = #tpu.dot_dimension_numbers<[1], [0], [0], [1], [0, 0, 1, 1], [], []>} : vector<2x32xbf16>, vector<32x8192xbf16>, vector<2x8192xf32> -> vector<2x8192xf32>
    %c0_3 = arith.constant 0 : index
    %c0_4 = arith.constant 0 : index
    %3 = vector.load %arg3[%c0_3, %c0_4] : memref<1x8192xf32, #tpu.memory_space<vmem>>, vector<1x8192xf32>
    %4 = vector.broadcast %3 : vector<1x8192xf32> to vector<2x8192xf32>
    %5 = arith.addf %2, %4 : vector<2x8192xf32>
    %cst_5 = arith.constant 0.000000e+00 : f32
    %6 = vector.broadcast %cst_5 : f32 to vector<2x8192xf32>
    %7 = arith.maximumf %5, %6 : vector<2x8192xf32>
    %8 = arith.truncf %7 : vector<2x8192xf32> to vector<2x8192xbf16>
    %c0_6 = arith.constant 0 : index
    %c0_7 = arith.constant 0 : index
    %9 = vector.load %arg4[%c0_6, %c0_7] : memref<2x8192xbf16, #tpu.memory_space<vmem>>, vector<2x8192xbf16>
    tpu.vector_store %arg4[%c0_6, %c0_7], %8 {strides = array<i32>} : memref<2x8192xbf16, #tpu.memory_space<vmem>>, vector<2x8192xbf16>,
    return
  }
  func.func @transform_0(%arg0: i32) -> (i32, i32) {
    %c0_i32 = arith.constant 0 : i32
    %c0_i32_0 = arith.constant 0 : i32
    %c0_i32_1 = arith.constant 0 : i32
    return %c0_i32, %c0_i32_0 : i32, i32
  }
  func.func @transform_1(%arg0: i32) -> (i32, i32) {
    %c0_i32 = arith.constant 0 : i32
    %c0_i32_0 = arith.constant 0 : i32
    return %c0_i32, %arg0 : i32, i32
  }
  func.func @transform_2(%arg0: i32) -> (i32, i32) {
    %c0_i32 = arith.constant 0 : i32
    %c0_i32_0 = arith.constant 0 : i32
    return %c0_i32, %arg0 : i32, i32
  }
  func.func @transform_3(%arg0: i32) -> (i32, i32) {
    %c0_i32 = arith.constant 0 : i32
    %c0_i32_0 = arith.constant 0 : i32
    return %c0_i32, %arg0 : i32, i32
  }
}

</mosaic_0001>

<bundles_post_ra>
// kernel: tpu_custom_call.1
= control target key start
LH: loop header
LB: loop body
LE: loop exit
PB: predicated region body
PF: predicated region fallthrough
CT: control target
= control target key end

     0   :  { %8 = vsyncpa [#allocation3], 0  ;;  %s4465_s0 = inlined_call_operand.hbm [shape: bf16[2,32], index: 0, kind: input, shape index: {}]   ;;  %s4466_s1 = inlined_call_operand.hbm [shape: bf16[32,32768], index: 1, kind: input, shape index: {}]   ;;  %s4467_s2 = inlined_call_operand.hbm [shape: f32[1,32768], index: 2, kind: input, shape index: {}]   ;;  %s4468_s3 = inlined_call_operand.hbm [shape: bf16[2,32768], index: 3, kind: output, shape index: {}]  }
   0x1   :  { %9 = vsyncpa [#allocation6], 0 }
   0x2   :  { %11 = vsyncpa [#allocation6 + $0x1], 0 }
   0x3   :  { %12 = vsyncpa [#allocation4], 0 }
   0x4   :  { %14 = vsyncpa [#allocation4 + $0x1], 0  ;;  %s3850_s12 = smov 0   ;;  %s3852_s13 = smov 0  }
   0x5   :  { %s3854_s14 = smov 0   ;;  %s3856_s15 = smov 0  }
   0x6 LB: > { %s3871_s16 = sadd.s32 1, %s3819_s15   ;;  %s48_s17 = sadd.s32 1, %s3815_s14  ;;  %s3819_s15 = sphi %s3856_s15, %s4494_s15   ;;  %s3815_s14 = sphi %s3854_s14, %s4493_s14   ;;  %s3811_s13 = sphi %s3852_s13, %s4492_s13   ;;  %s3807_s12 = sphi %s3850_s12, %s4491_s12  }
   0x7   : > { %s45_s18 = ssub.s32 %s3819_s15, %s3871_s16  ;;  %p55_p0 = scmp.ne.s32.totalorder %s3815_s14, %s3811_s13 }
   0x8   : > { %p46_p1 = scmp.eq.s32.totalorder %s45_s18, 0  ;;  %p56_p2 = scmp.eq.s32.totalorder %s3819_s15, 0 }
   0x9   : > { %p3620_p3 = scmp.lt.s32.totalorder %s3819_s15, 4  ;;  %s148_s20 = sand.u32 1, %s3819_s15  }
   0xa   : > { %s3881_s19 = scalar_select %p46_p1, %s3815_s14, %s48_s17  }
   0xb   : > { %p57_p4 = por %p56_p2, %p55_p0  ;;  %s150_s21 = sand.u32 1, %s3815_s14  }
   0xc   : > { %s3383_s22 = sshll.u32 %s150_s21, 10  ;;  %s3591_s23 = sshll.u32 %s3819_s15, 12 }
   0xd   : > { %s3894_s26 = scalar_lea.hbm %s4466_s1, %s3591_s23  ;;  %s152_s27 = scalar_lea.vmem [#allocation5], %s3383_s22 }
   0xe   : > { %s159_s28 = sshll.u32 %s152_s27, 4  ;;  %p3896_p5 = pnand %p3620_p3, %p57_p4  ;;  %s3900_s28 = int_to_ptr.vmem [resolvable:$true] %s159_s28 }
   0xf   : > { %s3902_s30 = scalar_lea.sflag [#allocation6], %s148_s20  ;;  %s3661_s4 = scalar_lea.hbm %s3894_s26, 16384 }
  0x10   : > { %s4476_s29 = scalar_select %p3896_p5, 1, 0 }
  0x11   : > { %p3662_p6 = scmp.ne.s32.totalorder %s3894_s26, %s3661_s4  ;;  %p4470_p7 = pneg %p3896_p5 }
  0x12   : > { %s3666_s7 = scalar_lea.hbm %s4466_s1, 65536  ;;  %p3667_p10 = scmp.lt.u32.totalorder %s3894_s26, %s4466_s1 }
  0x13   : > { %p3664_p8 = pnand %p4470_p7, %p3662_p6  ;;  %p3668_p11 = scmp.lt.u32.totalorder %s3666_s7, %s3661_s4 }
  0x14   : > { %p3670_p13 = scmp.lt.u32.totalorder %s3661_s4, %s3894_s26 }
  0x15   : > { %p3665_p9 = pneg %p3664_p8  ;;  %p3669_p12 = por %p3668_p11, %p3667_p10 }
  0x17   : > { %p3671_p1 = por %p3670_p13, %p3669_p12 }
  0x19   : > { %p3672_p2 = pnand %p3671_p1, %p3665_p9 }
  0x1b   : > { %3675 = shalt.err (!%p3672_p2)
}
  0x1c   : > { %s3676_s10 = scalar_lea.vmem %s3900_s28, 16384  ;;  %s3821_s11 = smov [#allocation5]  }
  0x1d   : > { %p3677_p3 = scmp.ne.s32.totalorder %s3900_s28, %s3676_s10  ;;  %s3681_s17 = sshll.u32 %s3821_s11, 4  ;;  %s3682_s17 = int_to_ptr.vmem [resolvable:$false] %s3681_s17 }
  0x1e   : > { %s3683_s18 = scalar_lea.vmem %s3682_s17, 32768  ;;  %p3684_p8 = scmp.lt.s32.totalorder %s3900_s28, %s3682_s17 }
  0x1f   : > { %p3679_p4 = pnand %p3677_p3, %p4470_p7  ;;  %p3685_p10 = scmp.lt.s32.totalorder %s3683_s18, %s3676_s10 }
  0x21   : > { %p3680_p6 = pneg %p3679_p4  ;;  %p3686_p11 = por %p3685_p10, %p3684_p8 }
  0x23   : > { %p3687_p12 = pnand %p3686_p11, %p3680_p6 }
  0x25   : > { %3690 = shalt.err (!%p3687_p12)
}
  0x26   : > { %s3822_s20 = smov 16384   ;;  %s3823_s22 = smov 4096  }
  0x27   : > { %s3824_s23 = smov 256   ;;  %s3931_s24 = sadd.s32 4294967295, %s3819_s15  }
  0x28   : > { %3611 = dma.hbm_to_vmem [thread:$0]  (!%p3896_p5), %s3894_s26, 16384, %s3900_s28, %s3902_s30, %s3822_s20, %s3823_s22, %s3824_s23  }
  0x29   : > { %s3379_s25 = sadd.s32 4294967294, %s3819_s15   ;;  %p61_p9 = scmp.ne.s32.totalorder %s3811_s13, %s3807_s12 }
  0x2a   : > { %p4469_p13 = scmp.eq.s32.totalorder %s3931_s24, 0  ;;  %p111_p1 = scmp.eq.s32.totalorder %s3931_s24, 3 }
  0x2b   : > { %p117_p2 = scmp.eq.s32.totalorder %s3379_s25, 3  ;;  %p3380_p3 = scmp.ge.s32.totalorder %s3819_s15, 1 }
  0x2c   : > { %p3941_p4 = por %p4469_p13, %p61_p9  ;;  %p3948_p6 = por %p111_p1, %p55_p0 }
  0x2d   : > { %p3952_p8 = por %p117_p2, %p61_p9  ;;  %p124_p10 = scmp.lt.s32.totalorder %s3819_s15, 5 }
  0x2e   : > { %s4477_s27 = scalar_select %p3941_p4, 1, 0 }
  0x2f   : > { %s4478_s26 = scalar_select %p3948_p6, 1, 0 }
  0x30   : > { %s4479_s28 = scalar_select %p3952_p8, 1, 0 }
  0x31   : > { %p3957_p11 = pnand %p3380_p3, %p124_p10  ;;  %s3825_s5 = smov [#allocation2]  }
  0x32   : > { %s137_s6 = sshll.u32 %s3825_s5, 4  ;;  %s3386_s7 = sshll.u32 %s150_s21, 6  ;;  %s138_s6 = int_to_ptr.vmem [resolvable:$true] %s137_s6 }
  0x33   : > { %s4480_s4 = scalar_select %p3957_p11, 1, 0 }
  0x34   : > { %p3604_p12 = pneg %p3957_p11  ;;  %s3592_s8 = sshll.u32 %s3819_s15, 10 }
  0x35   : > { %s173_s9 = scalar_lea.vmem [#allocation7], %s3386_s7  ;;  %s3975_s20 = scalar_lea.hbm %s4467_s2, %s3592_s8 }
  0x36   : > { %s181_s10 = sshll.u32 %s173_s9, 4  ;;  %p3968_p0 = pnand %p3604_p12, %p4469_p13  ;;  %s3977_s10 = int_to_ptr.vmem [resolvable:$true] %s181_s10 }
  0x37   : > { %s3691_s23 = scalar_lea.hbm %s4465_s0, 16 }
  0x38   : > { %p3692_p9 = scmp.ne.s32.totalorder %s4465_s0, %s3691_s23  ;;  %p3693_p1 = pneg %p3968_p0 }
  0x39   : > { %p3698_p10 = scmp.lt.u32.totalorder %s3691_s23, %s4465_s0 }
  0x3a   : > { %p3694_p2 = pnand %p3693_p1, %p3692_p9 }
  0x3c   : > { %p3695_p3 = pneg %p3694_p2 }
  0x3e   : > { %p3700_p12 = pnand %p3698_p10, %p3695_p3 }
  0x40   : > { %3703 = shalt.err (!%p3700_p12)
}
  0x41   : > { %s3704_s8 = scalar_lea.vmem %s138_s6, 16  ;;  %s3711_s17 = scalar_lea.vmem %s138_s6, 32 }
  0x42   : > { %p3705_p13 = scmp.ne.s32.totalorder %s138_s6, %s3704_s8  ;;  %p3712_p6 = scmp.lt.s32.totalorder %s138_s6, %s138_s6 }
  0x43   : > { %p3713_p4 = scmp.lt.s32.totalorder %s3711_s17, %s3704_s8 }
  0x44   : > { %p3707_p7 = pnand %p3705_p13, %p3693_p1 }
  0x45   : > { %p3714_p11 = por %p3713_p4, %p3712_p6 }
  0x46   : > { %p3708_p8 = pneg %p3707_p7 }
  0x48   : > { %p3715_p5 = pnand %p3714_p11, %p3708_p8 }
  0x4a   : > { %3718 = shalt.err (!%p3715_p5)
}
  0x4b   : > { %3607 = dma.hbm_to_vmem [thread:$0]  (!%p3968_p0), %s4465_s0, 16, %s138_s6, [#allocation3]  }
  0x4c   : > { %s3719_s22 = scalar_lea.hbm %s3975_s20, 1024  ;;  %p4482_p7 = scmp.ne.s32.totalorder %s4476_s29, 0 }
  0x4d   : > { %p3720_p13 = scmp.ne.s32.totalorder %s3975_s20, %s3719_s22  ;;  %s3724_s5 = scalar_lea.hbm %s4467_s2, 4096 }
  0x4e   : > { %p4483_p9 = pneg %p4482_p7  ;;  %p3725_p5 = scmp.lt.u32.totalorder %s3975_s20, %s4467_s2 }
  0x4f   : > { %p3726_p4 = scmp.lt.u32.totalorder %s3724_s5, %s3719_s22  ;;  %p3728_p8 = scmp.lt.u32.totalorder %s3719_s22, %s3975_s20 }
  0x50   : > { %p3722_p1 = pnand %p3720_p13, %p4483_p9 }
  0x51   : > { %p3727_p6 = por %p3726_p4, %p3725_p5 }
  0x52   : > { %p3723_p2 = pneg %p3722_p1 }
  0x53   : > { %p3729_p11 = por %p3728_p8, %p3727_p6 }
  0x55   : > { %p3730_p3 = pnand %p3729_p11, %p3723_p2 }
  0x57   : > { %3733 = shalt.err (!%p3730_p3)
}
  0x58   : > { %s3734_s6 = scalar_lea.vmem %s3977_s10, 1024  ;;  %p4484_p10 = pmov %p4483_p9 }
  0x59   : > { %p3735_p0 = scmp.ne.s32.totalorder %s3977_s10, %s3734_s6  ;;  %s3826_s9 = smov [#allocation7]  }
  0x5a   : > { %s3739_s8 = sshll.u32 %s3826_s9, 4  ;;  %s3740_s8 = int_to_ptr.vmem [resolvable:$false] %s3739_s8 }
  0x5b   : > { %p3737_p12 = pnand %p3735_p0, %p4484_p10  ;;  %s3741_s17 = scalar_lea.vmem %s3740_s8, 2048 }
  0x5c   : > { %p3742_p9 = scmp.lt.s32.totalorder %s3977_s10, %s3740_s8  ;;  %p3743_p1 = scmp.lt.s32.totalorder %s3741_s17, %s3734_s6 }
  0x5d   : > { %p3738_p13 = pneg %p3737_p12 }
  0x5e   : > { %p3744_p5 = por %p3743_p1, %p3742_p9 }
  0x60   : > { %p3745_p4 = pnand %p3744_p5, %p3738_p13 }
  0x62   : > { %3748 = shalt.err (!%p3745_p4)
}
  0x63   : > { %3614 = dma.hbm_to_vmem [thread:$0]  (!%p4482_p7), %s3975_s20, 1024, %s3977_s10, %s3902_s30  }
  0x64   : > { %p4485_p2 = scmp.ne.s32.totalorder %s4480_s4, 0 }
  0x65   : > { %p4486_p6 = scmp.eq.s32.totalorder (!%p4485_p2), %s3931_s24, 0 }
  0x66   : > { %190 = sbr.rel (%p4485_p2) target bundleno = 488 (0x1e8), region = 32 }
  0x6d   : > { %3794 = dma.done.wait (%p4486_p6), [#allocation3], 16   ;;  %p4487_p8 = pmov %p4486_p6 }
  0x6e   : > { %s196_s18 = sand.u32 1, %s3931_s24   ;;  %s4027_s21 = sand.u32 1, %s3811_s13  }
  0x6f   : > { %3796 = vsyncadd (%p4487_p8), [#allocation3], 4294967280  ;;  %s3391_s29 = sshll.u32 %s4027_s21, 10  ;;  %s197_s22 = scalar_lea.sflag [#allocation6], %s196_s18 }
  0x70   : > { %s4030_s23 = scalar_lea.vmem [#allocation5], %s3391_s29  ;;  %p4488_p7 = scmp.ne.s32.totalorder %s4477_s27, 0 }
  0x72   : > { %3798 = dma.done.wait (%p4488_p7), %s197_s22, 17408  }
  0x73   : > { %3800 = vsyncadd (%p4488_p7), %s197_s22, 4294949888  ;;  %v3827_v0 = vmov 0   ;;  %v242_v1 = vld [vmem:[%s4030_s23] sm:$0xff]  ;;  %v243_v3 = vld [vmem:[%s4030_s23 + $0x8] sm:$0xff]  ;;  %vm1346_vm0 = vcmask 261120   ;;  %s3392_s30 = sshll.u32 %s4027_s21, 6 }
  0x74   : > { %1382 = vmatprep.mubr.bf16.mxu0 %v3827_v0  ;;  %1423 = vmatprep.mubr.bf16.mxu1 %v3827_v0  ;;  %v274_v2 = vld [vmem:[%s4030_s23 + $0x100] sm:$0xff]  ;;  %v275_v5 = vld [vmem:[%s4030_s23 + $0x108] sm:$0xff]  ;;  %v244_v15 = vld [vmem:[%s4030_s23 + $0x10] sm:$0xff]  ;;  %s4267_s27 = scalar_lea.vmem [#allocation7], %s3392_s30  ;;  %s4312_s4 = scalar_lea.vmem [#allocation8], %s3392_s30 }
  0x75   : > { %v3395_v4 = vcombine.high %v242_v1, %v274_v2  ;;  %v3394_v6 = vcombine.low %v242_v1, %v274_v2  ;;  %v306_v7 = vld [vmem:[%s4030_s23 + $0x200] sm:$0xff]  ;;  %v3397_v9 = vcombine.high %v243_v3, %v275_v5  ;;  %v3396_v10 = vcombine.low %v243_v3, %v275_v5  ;;  %v307_v12 = vld [vmem:[%s4030_s23 + $0x208] sm:$0xff]  ;;  %v276_v16 = vld [vmem:[%s4030_s23 + $0x110] sm:$0xff]  ;;  %s3593_s10 = sshll.u32 %s3931_s24, 10  ;;  %s3277_s20 = sshll.u32 %s4312_s4, 4  ;;  %s4423_s20 = int_to_ptr.vmem [resolvable:$true] %s3277_s20 }
  0x76   : > { %v338_v8 = vld [vmem:[%s4030_s23 + $0x300] sm:$0xff]  ;;  %v339_v13 = vld [vmem:[%s4030_s23 + $0x308] sm:$0xff]  ;;  %v245_v17 = vld [vmem:[%s4030_s23 + $0x18] sm:$0xff]  ;;  %v3399_v21 = vcombine.high %v244_v15, %v276_v16  ;;  %v3398_v28 = vcombine.low %v244_v15, %v276_v16  ;;  %s4421_s11 = scalar_lea.hbm %s4468_s3, %s3593_s10  ;;  %s3263_s7 = scalar_lea.sflag [#allocation4], %s4027_s21 }
  0x77   : > { %v3459_v11 = vcombine.high %v306_v7, %v338_v8  ;;  %1350 = vmatprep.subr.bf16.mxu0 %v3395_v4  ;;  %v3461_v14 = vcombine.high %v307_v12, %v339_v13  ;;  %1391 = vmatprep.subr.bf16.mxu1 %v3397_v9  ;;  %v3458_v18 = vcombine.low %v306_v7, %v338_v8  ;;  %v277_v19 = vld [vmem:[%s4030_s23 + $0x118] sm:$0xff]  ;;  %v308_v23 = vld [vmem:[%s4030_s23 + $0x210] sm:$0xff]  ;;  %v246_v32 = vld [vmem:[%s4030_s23 + $0x20] sm:$0xff]  ;;  %s3749_s6 = scalar_lea.vmem %s4423_s20, 1024  ;;  %p4489_p3 = scmp.ne.s32.totalorder %s4478_s26, 0 }
  0x78   : > { %1351 = vmatpush1.bf16.msra.mxu0 %v3394_v6  ;;  %1392 = vmatpush1.bf16.msra.mxu1 %v3396_v10  ;;  %v3460_v20 = vcombine.low %v307_v12, %v339_v13  ;;  %v3401_v22 = vcombine.high %v245_v17, %v277_v19  ;;  %v340_v24 = vld [vmem:[%s4030_s23 + $0x310] sm:$0xff]  ;;  %v309_v25 = vld [vmem:[%s4030_s23 + $0x218] sm:$0xff]  ;;  %v3400_v29 = vcombine.low %v245_v17, %v277_v19  ;;  %v278_v33 = vld [vmem:[%s4030_s23 + $0x120] sm:$0xff]  ;;  %p3750_p11 = scmp.ne.s32.totalorder %s4423_s20, %s3749_s6  ;;  %s3829_s24 = smov [#allocation8]  }
  0x79   : > { %1352 = vmatprep.subr.bf16.mxu0 %v3459_v11  ;;  %1393 = vmatprep.subr.bf16.mxu1 %v3461_v14  ;;  %v341_v26 = vld [vmem:[%s4030_s23 + $0x318] sm:$0xff]  ;;  %v3463_v30 = vcombine.high %v308_v23, %v340_v24  ;;  %v247_v34 = vld [vmem:[%s4030_s23 + $0x28] sm:$0xff]  ;;  %v3462_v36 = vcombine.low %v308_v23, %v340_v24  ;;  %v3403_v38 = vcombine.high %v246_v32, %v278_v33  ;;  %v310_v40 = vld [vmem:[%s4030_s23 + $0x220] sm:$0xff]  ;;  %s3753_s9 = sshll.u32 %s3829_s24, 4  ;;  %s3754_s9 = int_to_ptr.vmem [resolvable:$false] %s3753_s9 }
  0x7a   : > { %v4054_v27 = vld [vmem:[#allocation2] sm:$0x1]  ;;  %v3465_v31 = vcombine.high %v309_v25, %v341_v26  ;;  %v279_v35 = vld [vmem:[%s4030_s23 + $0x128] sm:$0xff]  ;;  %v3464_v37 = vcombine.low %v309_v25, %v341_v26  ;;  %v342_v41 = vld [vmem:[%s4030_s23 + $0x320] sm:$0xff]  ;;  %v3402_v44 = vcombine.low %v246_v32, %v278_v33  ;;  %p3751_p0 = pnand %p3750_p11, %p4489_p3  ;;  %s3755_s8 = scalar_lea.vmem %s3754_s9, 2048 }
  0x7b   : > { %v3405_v39 = vcombine.high %v247_v34, %v279_v35  ;;  %v311_v42 = vld [vmem:[%s4030_s23 + $0x228] sm:$0xff]  ;;  %v3404_v45 = vcombine.low %v247_v34, %v279_v35  ;;  %v3467_v46 = vcombine.high %v310_v40, %v342_v41  ;;  %v248_v48 = vld [vmem:[%s4030_s23 + $0x30] sm:$0xff]  ;;  %v249_v50 = vld [vmem:[%s4030_s23 + $0x38] sm:$0xff]  ;;  %v3466_v52 = vcombine.low %v310_v40, %v342_v41  ;;  %p3756_p12 = scmp.lt.s32.totalorder %s4423_s20, %s3754_s9  ;;  %p3757_p13 = scmp.lt.s32.totalorder %s3755_s8, %s3749_s6 }
  0x7c   : > { %1353 = vmatpush1.bf16.msra.mxu0 %v3458_v18  ;;  %1394 = vmatpush1.bf16.msra.mxu1 %v3460_v20  ;;  %v343_v43 = vld [vmem:[%s4030_s23 + $0x328] sm:$0xff]  ;;  %v280_v49 = vld [vmem:[%s4030_s23 + $0x130] sm:$0xff]  ;;  %v281_v51 = vld [vmem:[%s4030_s23 + $0x138] sm:$0xff]  ;;  %p3752_p10 = pneg %p3751_p0 }
  0x7d   : > { %1432 = vmatprep.subr.bf16.mxu0 %v3399_v21  ;;  %1473 = vmatprep.subr.bf16.mxu1 %v3401_v22  ;;  %v3469_v47 = vcombine.high %v311_v42, %v343_v43  ;;  %v3468_v53 = vcombine.low %v311_v42, %v343_v43  ;;  %v3407_v54 = vcombine.high %v248_v48, %v280_v49  ;;  %v312_v56 = vld [vmem:[%s4030_s23 + $0x230] sm:$0xff]  ;;  %v313_v58 = vld [vmem:[%s4030_s23 + $0x238] sm:$0xff]  ;;  %v250_v1 = vld [vmem:[%s4030_s23 + $0x40] sm:$0xff]  ;;  %p3758_p9 = por %p3757_p13, %p3756_p12 }
  0x7e   : > { %v3409_v55 = vcombine.high %v249_v50, %v281_v51  ;;  %v344_v57 = vld [vmem:[%s4030_s23 + $0x330] sm:$0xff]  ;;  %v345_v59 = vld [vmem:[%s4030_s23 + $0x338] sm:$0xff]  ;;  %v3406_v60 = vcombine.low %v248_v48, %v280_v49  ;;  %v3408_v61 = vcombine.low %v249_v50, %v281_v51  ;;  %v282_v2 = vld [vmem:[%s4030_s23 + $0x140] sm:$0xff] }
  0x7f   : > { %3522 = vmatmul.mubr.msk.bf16.vlgmr.msra.gmra.mrb[0].mxu0 %vm1346_vm0, %v4054_v27  ;;  %3523 = vmatmul.mubr.msk.bf16.vlgmr.msra.gmra.mrb[0].mxu1 %vm1346_vm0, %v4054_v27  ;;  %v3471_v62 = vcombine.high %v312_v56, %v344_v57  ;;  %v3473_v63 = vcombine.high %v313_v58, %v345_v59  ;;  %v251_v3 = vld [vmem:[%s4030_s23 + $0x48] sm:$0xff]  ;;  %v3470_v5 = vcombine.low %v312_v56, %v344_v57  ;;  %v314_v9 = vld [vmem:[%s4030_s23 + $0x240] sm:$0xff]  ;;  %v252_v17 = vld [vmem:[%s4030_s23 + $0x50] sm:$0xff]  ;;  %p3759_p1 = pnand %p3758_p9, %p3752_p10 }
  0x80   : > { %1433 = vmatpush1.bf16.msra.mxu0 %v3398_v28  ;;  %1474 = vmatpush1.bf16.msra.mxu1 %v3400_v29  ;;  %v283_v4 = vld [vmem:[%s4030_s23 + $0x148] sm:$0xff]  ;;  %v3472_v6 = vcombine.low %v313_v58, %v345_v59  ;;  %v3411_v7 = vcombine.high %v250_v1, %v282_v2  ;;  %v346_v10 = vld [vmem:[%s4030_s23 + $0x340] sm:$0xff]  ;;  %v3410_v13 = vcombine.low %v250_v1, %v282_v2  ;;  %v284_v18 = vld [vmem:[%s4030_s23 + $0x150] sm:$0xff] }
  0x81   : > { %1434 = vmatprep.subr.bf16.mxu0 %v3463_v30  ;;  %1475 = vmatprep.subr.bf16.mxu1 %v3465_v31  ;;  %v3413_v8 = vcombine.high %v251_v3, %v283_v4  ;;  %v315_v11 = vld [vmem:[%s4030_s23 + $0x248] sm:$0xff]  ;;  %v3412_v14 = vcombine.low %v251_v3, %v283_v4  ;;  %v3475_v15 = vcombine.high %v314_v9, %v346_v10  ;;  %v253_v19 = vld [vmem:[%s4030_s23 + $0x58] sm:$0xff]  ;;  %v316_v25 = vld [vmem:[%s4030_s23 + $0x250] sm:$0xff] }
  0x82   : > { %1464 = vmatprep.mubr.bf16.mxu0 %v3827_v0  ;;  %1505 = vmatprep.mubr.bf16.mxu1 %v3827_v0  ;;  %v347_v12 = vld [vmem:[%s4030_s23 + $0x348] sm:$0xff]  ;;  %v285_v20 = vld [vmem:[%s4030_s23 + $0x158] sm:$0xff]  ;;  %v3474_v21 = vcombine.low %v314_v9, %v346_v10  ;;  %v3415_v23 = vcombine.high %v252_v17, %v284_v18  ;;  %v348_v26 = vld [vmem:[%s4030_s23 + $0x350] sm:$0xff]  ;;  %v3414_v30 = vcombine.low %v252_v17, %v284_v18 }
  0x83   : > { %v3477_v16 = vcombine.high %v315_v11, %v347_v12  ;;  %v3476_v22 = vcombine.low %v315_v11, %v347_v12  ;;  %v3417_v24 = vcombine.high %v253_v19, %v285_v20  ;;  %v317_v28 = vld [vmem:[%s4030_s23 + $0x258] sm:$0xff]  ;;  %v3416_v31 = vcombine.low %v253_v19, %v285_v20  ;;  %v254_v34 = vld [vmem:[%s4030_s23 + $0x60] sm:$0xff]  ;;  %v256_v50 = vld [vmem:[%s4030_s23 + $0x70] sm:$0xff] }
  0x84   : > { %1435 = vmatpush1.bf16.msra.mxu0 %v3462_v36  ;;  %1476 = vmatpush1.bf16.msra.mxu1 %v3464_v37  ;;  %v349_v29 = vld [vmem:[%s4030_s23 + $0x358] sm:$0xff]  ;;  %v3479_v32 = vcombine.high %v316_v25, %v348_v26  ;;  %v286_v35 = vld [vmem:[%s4030_s23 + $0x160] sm:$0xff]  ;;  %v255_v36 = vld [vmem:[%s4030_s23 + $0x68] sm:$0xff] }
  0x85   : > { %1514 = vmatprep.subr.bf16.mxu0 %v3403_v38  ;;  %1555 = vmatprep.subr.bf16.mxu1 %v3405_v39  ;;  %v3481_v33 = vcombine.high %v317_v28, %v349_v29  ;;  %v287_v37 = vld [vmem:[%s4030_s23 + $0x168] sm:$0xff]  ;;  %v3478_v38 = vcombine.low %v316_v25, %v348_v26  ;;  %v3480_v39 = vcombine.low %v317_v28, %v349_v29  ;;  %v318_v42 = vld [vmem:[%s4030_s23 + $0x260] sm:$0xff]  ;;  %v288_v51 = vld [vmem:[%s4030_s23 + $0x170] sm:$0xff] }
  0x86   : > { %v3419_v40 = vcombine.high %v254_v34, %v286_v35  ;;  %v3421_v41 = vcombine.high %v255_v36, %v287_v37  ;;  %v350_v43 = vld [vmem:[%s4030_s23 + $0x360] sm:$0xff]  ;;  %v3423_v56 = vcombine.high %v256_v50, %v288_v51  ;;  %v320_v58 = vld [vmem:[%s4030_s23 + $0x270] sm:$0xff] }
  0x87   : > { %3524 = vmatmul.mubr.msk.bf16.vlgmr.msra.gmra.mrb[4].mxu0 %vm1346_vm0, %v4054_v27  ;;  %3525 = vmatmul.mubr.msk.bf16.vlgmr.msra.gmra.mrb[4].mxu1 %vm1346_vm0, %v4054_v27  ;;  %v3483_v48 = vcombine.high %v318_v42, %v350_v43  ;;  %v352_v59 = vld [vmem:[%s4030_s23 + $0x370] sm:$0xff]  ;;  %v258_v3 = vld [vmem:[%s4030_s23 + $0x80] sm:$0xff] }
  0x88   : > { %1515 = vmatpush1.bf16.msra.mxu0 %v3402_v44  ;;  %1556 = vmatpush1.bf16.msra.mxu1 %v3404_v45  ;;  %v319_v44 = vld [vmem:[%s4030_s23 + $0x268] sm:$0xff]  ;;  %v3487_v1 = vcombine.high %v320_v58, %v352_v59  ;;  %v290_v4 = vld [vmem:[%s4030_s23 + $0x180] sm:$0xff]  ;;  %v260_v19 = vld [vmem:[%s4030_s23 + $0x90] sm:$0xff] }
  0x89   : > { %1516 = vmatprep.subr.bf16.mxu0 %v3467_v46  ;;  %1557 = vmatprep.subr.bf16.mxu1 %v3469_v47  ;;  %v351_v45 = vld [vmem:[%s4030_s23 + $0x368] sm:$0xff]  ;;  %v3418_v46 = vcombine.low %v254_v34, %v286_v35  ;;  %v3420_v47 = vcombine.low %v255_v36, %v287_v37  ;;  %v3427_v9 = vcombine.high %v258_v3, %v290_v4  ;;  %v322_v11 = vld [vmem:[%s4030_s23 + $0x280] sm:$0xff]  ;;  %v292_v20 = vld [vmem:[%s4030_s23 + $0x190] sm:$0xff] }
  0x8a   : > { %1546 = vmatprep.mubr.bf16.mxu0 %v3827_v0  ;;  %1587 = vmatprep.mubr.bf16.mxu1 %v3827_v0  ;;  %v3485_v49 = vcombine.high %v319_v44, %v351_v45  ;;  %v354_v12 = vld [vmem:[%s4030_s23 + $0x380] sm:$0xff]  ;;  %v3431_v25 = vcombine.high %v260_v19, %v292_v20  ;;  %v324_v28 = vld [vmem:[%s4030_s23 + $0x290] sm:$0xff] }
  0x8b   : > { %v3491_v17 = vcombine.high %v322_v11, %v354_v12  ;;  %v356_v29 = vld [vmem:[%s4030_s23 + $0x390] sm:$0xff]  ;;  %v262_v36 = vld [vmem:[%s4030_s23 + $0xa0] sm:$0xff] }
  0x8c   : > { %1517 = vmatpush1.bf16.msra.mxu0 %v3466_v52  ;;  %1558 = vmatpush1.bf16.msra.mxu1 %v3468_v53  ;;  %v257_v52 = vld [vmem:[%s4030_s23 + $0x78] sm:$0xff]  ;;  %v3495_v34 = vcombine.high %v324_v28, %v356_v29  ;;  %v294_v37 = vld [vmem:[%s4030_s23 + $0x1a0] sm:$0xff] }
  0x8d   : > { %1596 = vmatprep.subr.bf16.mxu0 %v3407_v54  ;;  %1637 = vmatprep.subr.bf16.mxu1 %v3409_v55  ;;  %v289_v53 = vld [vmem:[%s4030_s23 + $0x178] sm:$0xff]  ;;  %v3482_v54 = vcombine.low %v318_v42, %v350_v43  ;;  %v3484_v55 = vcombine.low %v319_v44, %v351_v45  ;;  %v3435_v42 = vcombine.high %v262_v36, %v294_v37  ;;  %v326_v44 = vld [vmem:[%s4030_s23 + $0x2a0] sm:$0xff] }
  0x8e   : > { %v3425_v57 = vcombine.high %v257_v52, %v289_v53  ;;  %v358_v45 = vld [vmem:[%s4030_s23 + $0x3a0] sm:$0xff] }
  0x8f   : > { %3526 = vmatmul.mubr.msk.bf16.vlgmr.msra.gmra.mrb[8].mxu0 %vm1346_vm0, %v4054_v27  ;;  %3527 = vmatmul.mubr.msk.bf16.vlgmr.msra.gmra.mrb[8].mxu1 %vm1346_vm0, %v4054_v27 }
  0x90   : > { %1597 = vmatpush1.bf16.msra.mxu0 %v3406_v60  ;;  %1638 = vmatpush1.bf16.msra.mxu1 %v3408_v61  ;;  %v321_v60 = vld [vmem:[%s4030_s23 + $0x278] sm:$0xff] }
  0x91   : > { %1598 = vmatprep.subr.bf16.mxu0 %v3471_v62  ;;  %1639 = vmatprep.subr.bf16.mxu1 %v3473_v63  ;;  %v353_v61 = vld [vmem:[%s4030_s23 + $0x378] sm:$0xff]  ;;  %v3422_v62 = vcombine.low %v256_v50, %v288_v51  ;;  %v3424_v63 = vcombine.low %v257_v52, %v289_v53  ;;  %v3499_v50 = vcombine.high %v326_v44, %v358_v45  ;;  %v264_v52 = vld [vmem:[%s4030_s23 + $0xb0] sm:$0xff] }
  0x92   : > { %1628 = vmatprep.mubr.bf16.mxu0 %v3827_v0  ;;  %1669 = vmatprep.mubr.bf16.mxu1 %v3827_v0  ;;  %v3489_v2 = vcombine.high %v321_v60, %v353_v61  ;;  %v296_v53 = vld [vmem:[%s4030_s23 + $0x1b0] sm:$0xff] }
  0x94   : > { %1599 = vmatpush1.bf16.msra.mxu0 %v3470_v5  ;;  %1640 = vmatpush1.bf16.msra.mxu1 %v3472_v6  ;;  %v259_v5 = vld [vmem:[%s4030_s23 + $0x88] sm:$0xff] }
  0x95   : > { %1678 = vmatprep.subr.bf16.mxu0 %v3411_v7  ;;  %1719 = vmatprep.subr.bf16.mxu1 %v3413_v8  ;;  %v291_v6 = vld [vmem:[%s4030_s23 + $0x188] sm:$0xff]  ;;  %v3486_v7 = vcombine.low %v320_v58, %v352_v59  ;;  %v3488_v8 = vcombine.low %v321_v60, %v353_v61  ;;  %v3439_v58 = vcombine.high %v264_v52, %v296_v53  ;;  %v328_v60 = vld [vmem:[%s4030_s23 + $0x2b0] sm:$0xff] }
  0x96   : > { %v3429_v10 = vcombine.high %v259_v5, %v291_v6  ;;  %v360_v61 = vld [vmem:[%s4030_s23 + $0x3b0] sm:$0xff] }
  0x97   : > { %3528 = vmatmul.mubr.msk.bf16.vlgmr.msra.gmra.mrb[12].mxu0 %vm1346_vm0, %v4054_v27  ;;  %3529 = vmatmul.mubr.msk.bf16.vlgmr.msra.gmra.mrb[12].mxu1 %vm1346_vm0, %v4054_v27 }
  0x98   : > { %1679 = vmatpush1.bf16.msra.mxu0 %v3410_v13  ;;  %1720 = vmatpush1.bf16.msra.mxu1 %v3412_v14  ;;  %v323_v13 = vld [vmem:[%s4030_s23 + $0x288] sm:$0xff] }
  0x99   : > { %1680 = vmatprep.subr.bf16.mxu0 %v3475_v15  ;;  %1721 = vmatprep.subr.bf16.mxu1 %v3477_v16  ;;  %v355_v14 = vld [vmem:[%s4030_s23 + $0x388] sm:$0xff]  ;;  %v3426_v15 = vcombine.low %v258_v3, %v290_v4  ;;  %v3428_v16 = vcombine.low %v259_v5, %v291_v6  ;;  %v3503_v3 = vcombine.high %v328_v60, %v360_v61  ;;  %v266_v5 = vld [vmem:[%s4030_s23 + $0xc0] sm:$0xff] }
  0x9a   : > { %1710 = vmatprep.mubr.bf16.mxu0 %v3827_v0  ;;  %1751 = vmatprep.mubr.bf16.mxu1 %v3827_v0  ;;  %v3493_v18 = vcombine.high %v323_v13, %v355_v14  ;;  %v298_v6 = vld [vmem:[%s4030_s23 + $0x1c0] sm:$0xff] }
  0x9c   : > { %1681 = vmatpush1.bf16.msra.mxu0 %v3474_v21  ;;  %1722 = vmatpush1.bf16.msra.mxu1 %v3476_v22  ;;  %v261_v21 = vld [vmem:[%s4030_s23 + $0x98] sm:$0xff] }
  0x9d   : > { %1760 = vmatprep.subr.bf16.mxu0 %v3415_v23  ;;  %1801 = vmatprep.subr.bf16.mxu1 %v3417_v24  ;;  %v293_v22 = vld [vmem:[%s4030_s23 + $0x198] sm:$0xff]  ;;  %v3490_v23 = vcombine.low %v322_v11, %v354_v12  ;;  %v3492_v24 = vcombine.low %v323_v13, %v355_v14  ;;  %v3443_v11 = vcombine.high %v266_v5, %v298_v6  ;;  %v330_v13 = vld [vmem:[%s4030_s23 + $0x2c0] sm:$0xff] }
  0x9e   : > { %v3433_v26 = vcombine.high %v261_v21, %v293_v22  ;;  %v362_v14 = vld [vmem:[%s4030_s23 + $0x3c0] sm:$0xff] }
  0x9f   : > { %3530 = vmatmul.mubr.msk.bf16.vlgmr.msra.gmra.mrb[16].mxu0 %vm1346_vm0, %v4054_v27  ;;  %3531 = vmatmul.mubr.msk.bf16.vlgmr.msra.gmra.mrb[16].mxu1 %vm1346_vm0, %v4054_v27 }
  0xa0   : > { %1761 = vmatpush1.bf16.msra.mxu0 %v3414_v30  ;;  %1802 = vmatpush1.bf16.msra.mxu1 %v3416_v31  ;;  %v325_v30 = vld [vmem:[%s4030_s23 + $0x298] sm:$0xff] }
  0xa1   : > { %1762 = vmatprep.subr.bf16.mxu0 %v3479_v32  ;;  %1803 = vmatprep.subr.bf16.mxu1 %v3481_v33  ;;  %v357_v31 = vld [vmem:[%s4030_s23 + $0x398] sm:$0xff]  ;;  %v3430_v32 = vcombine.low %v260_v19, %v292_v20  ;;  %v3432_v33 = vcombine.low %v261_v21, %v293_v22  ;;  %v3507_v19 = vcombine.high %v330_v13, %v362_v14  ;;  %v268_v21 = vld [vmem:[%s4030_s23 + $0xd0] sm:$0xff] }
  0xa2   : > { %1792 = vmatprep.mubr.bf16.mxu0 %v3827_v0  ;;  %1833 = vmatprep.mubr.bf16.mxu1 %v3827_v0  ;;  %v3497_v35 = vcombine.high %v325_v30, %v357_v31  ;;  %v300_v22 = vld [vmem:[%s4030_s23 + $0x1d0] sm:$0xff] }
  0xa4   : > { %1763 = vmatpush1.bf16.msra.mxu0 %v3478_v38  ;;  %1804 = vmatpush1.bf16.msra.mxu1 %v3480_v39  ;;  %v263_v38 = vld [vmem:[%s4030_s23 + $0xa8] sm:$0xff] }
  0xa5   : > { %1842 = vmatprep.subr.bf16.mxu0 %v3419_v40  ;;  %1883 = vmatprep.subr.bf16.mxu1 %v3421_v41  ;;  %v295_v39 = vld [vmem:[%s4030_s23 + $0x1a8] sm:$0xff]  ;;  %v3494_v40 = vcombine.low %v324_v28, %v356_v29  ;;  %v3496_v41 = vcombine.low %v325_v30, %v357_v31  ;;  %v3447_v28 = vcombine.high %v268_v21, %v300_v22  ;;  %v332_v30 = vld [vmem:[%s4030_s23 + $0x2d0] sm:$0xff] }
  0xa6   : > { %v3437_v43 = vcombine.high %v263_v38, %v295_v39  ;;  %v364_v31 = vld [vmem:[%s4030_s23 + $0x3d0] sm:$0xff] }
  0xa7   : > { %3532 = vmatmul.mubr.msk.bf16.vlgmr.msra.gmra.mrb[20].mxu0 %vm1346_vm0, %v4054_v27  ;;  %3533 = vmatmul.mubr.msk.bf16.vlgmr.msra.gmra.mrb[20].mxu1 %vm1346_vm0, %v4054_v27 }
  0xa8   : > { %1843 = vmatpush1.bf16.msra.mxu0 %v3418_v46  ;;  %1884 = vmatpush1.bf16.msra.mxu1 %v3420_v47  ;;  %v327_v46 = vld [vmem:[%s4030_s23 + $0x2a8] sm:$0xff] }
  0xa9   : > { %1844 = vmatprep.subr.bf16.mxu0 %v3483_v48  ;;  %1885 = vmatprep.subr.bf16.mxu1 %v3485_v49  ;;  %v359_v47 = vld [vmem:[%s4030_s23 + $0x3a8] sm:$0xff]  ;;  %v3434_v48 = vcombine.low %v262_v36, %v294_v37  ;;  %v3436_v49 = vcombine.low %v263_v38, %v295_v39  ;;  %v3511_v36 = vcombine.high %v332_v30, %v364_v31  ;;  %v270_v38 = vld [vmem:[%s4030_s23 + $0xe0] sm:$0xff] }
  0xaa   : > { %1874 = vmatprep.mubr.bf16.mxu0 %v3827_v0  ;;  %1915 = vmatprep.mubr.bf16.mxu1 %v3827_v0  ;;  %v3501_v51 = vcombine.high %v327_v46, %v359_v47  ;;  %v302_v39 = vld [vmem:[%s4030_s23 + $0x1e0] sm:$0xff] }
  0xac   : > { %1845 = vmatpush1.bf16.msra.mxu0 %v3482_v54  ;;  %1886 = vmatpush1.bf16.msra.mxu1 %v3484_v55  ;;  %v265_v54 = vld [vmem:[%s4030_s23 + $0xb8] sm:$0xff] }
  0xad   : > { %1924 = vmatprep.subr.bf16.mxu0 %v3423_v56  ;;  %1965 = vmatprep.subr.bf16.mxu1 %v3425_v57  ;;  %v297_v55 = vld [vmem:[%s4030_s23 + $0x1b8] sm:$0xff]  ;;  %v3498_v56 = vcombine.low %v326_v44, %v358_v45  ;;  %v3500_v57 = vcombine.low %v327_v46, %v359_v47  ;;  %v3451_v44 = vcombine.high %v270_v38, %v302_v39  ;;  %v334_v46 = vld [vmem:[%s4030_s23 + $0x2e0] sm:$0xff] }
  0xae   : > { %v3441_v59 = vcombine.high %v265_v54, %v297_v55  ;;  %v366_v47 = vld [vmem:[%s4030_s23 + $0x3e0] sm:$0xff] }
  0xaf   : > { %3534 = vmatmul.mubr.msk.bf16.vlgmr.msra.gmra.mrb[24].mxu0 %vm1346_vm0, %v4054_v27  ;;  %3535 = vmatmul.mubr.msk.bf16.vlgmr.msra.gmra.mrb[24].mxu1 %vm1346_vm0, %v4054_v27 }
  0xb0   : > { %1925 = vmatpush1.bf16.msra.mxu0 %v3422_v62  ;;  %1966 = vmatpush1.bf16.msra.mxu1 %v3424_v63  ;;  %v329_v62 = vld [vmem:[%s4030_s23 + $0x2b8] sm:$0xff] }
  0xb1   : > { %1926 = vmatprep.subr.bf16.mxu0 %v3487_v1  ;;  %1967 = vmatprep.subr.bf16.mxu1 %v3489_v2  ;;  %v361_v63 = vld [vmem:[%s4030_s23 + $0x3b8] sm:$0xff]  ;;  %v3438_v1 = vcombine.low %v264_v52, %v296_v53  ;;  %v3440_v2 = vcombine.low %v265_v54, %v297_v55  ;;  %v3515_v52 = vcombine.high %v334_v46, %v366_v47  ;;  %v272_v54 = vld [vmem:[%s4030_s23 + $0xf0] sm:$0xff] }
  0xb2   : > { %1956 = vmatprep.mubr.bf16.mxu0 %v3827_v0  ;;  %1997 = vmatprep.mubr.bf16.mxu1 %v3827_v0  ;;  %v3505_v4 = vcombine.high %v329_v62, %v361_v63  ;;  %v304_v55 = vld [vmem:[%s4030_s23 + $0x1f0] sm:$0xff] }
  0xb4   : > { %1927 = vmatpush1.bf16.msra.mxu0 %v3486_v7  ;;  %1968 = vmatpush1.bf16.msra.mxu1 %v3488_v8  ;;  %v267_v7 = vld [vmem:[%s4030_s23 + $0xc8] sm:$0xff] }
  0xb5   : > { %2006 = vmatprep.subr.bf16.mxu0 %v3427_v9  ;;  %2047 = vmatprep.subr.bf16.mxu1 %v3429_v10  ;;  %v299_v8 = vld [vmem:[%s4030_s23 + $0x1c8] sm:$0xff]  ;;  %v3502_v9 = vcombine.low %v328_v60, %v360_v61  ;;  %v3504_v10 = vcombine.low %v329_v62, %v361_v63  ;;  %v3455_v60 = vcombine.high %v272_v54, %v304_v55  ;;  %v336_v62 = vld [vmem:[%s4030_s23 + $0x2f0] sm:$0xff] }
  0xb6   : > { %v3445_v12 = vcombine.high %v267_v7, %v299_v8  ;;  %v368_v63 = vld [vmem:[%s4030_s23 + $0x3f0] sm:$0xff] }
  0xb7   : > { %3536 = vmatmul.mubr.msk.bf16.vlgmr.msra.gmra.mrb[28].mxu0 %vm1346_vm0, %v4054_v27  ;;  %3537 = vmatmul.mubr.msk.bf16.vlgmr.msra.gmra.mrb[28].mxu1 %vm1346_vm0, %v4054_v27 }
  0xb8   : > { %2007 = vmatpush1.bf16.msra.mxu0 %v3426_v15  ;;  %2048 = vmatpush1.bf16.msra.mxu1 %v3428_v16  ;;  %v331_v15 = vld [vmem:[%s4030_s23 + $0x2c8] sm:$0xff] }
  0xb9   : > { %2008 = vmatprep.subr.bf16.mxu0 %v3491_v17  ;;  %2049 = vmatprep.subr.bf16.mxu1 %v3493_v18  ;;  %v363_v16 = vld [vmem:[%s4030_s23 + $0x3c8] sm:$0xff]  ;;  %v3442_v17 = vcombine.low %v266_v5, %v298_v6  ;;  %v3444_v18 = vcombine.low %v267_v7, %v299_v8  ;;  %v3519_v5 = vcombine.high %v336_v62, %v368_v63 }
  0xba   : > { %2038 = vmatprep.mubr.bf16.mxu0 %v3827_v0  ;;  %2079 = vmatprep.mubr.bf16.mxu1 %v3827_v0  ;;  %v3509_v20 = vcombine.high %v331_v15, %v363_v16  ;;  %v3518_v7 = vcombine.low %v336_v62, %v368_v63 }
  0xbc   : > { %2009 = vmatpush1.bf16.msra.mxu0 %v3490_v23  ;;  %2050 = vmatpush1.bf16.msra.mxu1 %v3492_v24  ;;  %v269_v23 = vld [vmem:[%s4030_s23 + $0xd8] sm:$0xff] }
  0xbd   : > { %2088 = vmatprep.subr.bf16.mxu0 %v3431_v25  ;;  %2129 = vmatprep.subr.bf16.mxu1 %v3433_v26  ;;  %v301_v24 = vld [vmem:[%s4030_s23 + $0x1d8] sm:$0xff]  ;;  %v3506_v25 = vcombine.low %v330_v13, %v362_v14  ;;  %v3508_v26 = vcombine.low %v331_v15, %v363_v16  ;;  %v3828_v15 = vmov 1966171168  }
  0xbe   : > { %v3449_v29 = vcombine.high %v269_v23, %v301_v24  ;;  %v2859_v16 = vunpack.c.l.s4 %v3828_v15 }
  0xbf   : > { %3538 = vmatmul.mubr.msk.bf16.vlgmr.msra.gmra.mrb[32].mxu0 %vm1346_vm0, %v4054_v27  ;;  %3539 = vmatmul.mubr.msk.bf16.vlgmr.msra.gmra.mrb[32].mxu1 %vm1346_vm0, %v4054_v27 }
  0xc0   : > { %2089 = vmatpush1.bf16.msra.mxu0 %v3430_v32  ;;  %2130 = vmatpush1.bf16.msra.mxu1 %v3432_v33  ;;  %v333_v32 = vld [vmem:[%s4030_s23 + $0x2d8] sm:$0xff] }
  0xc1   : > { %2090 = vmatprep.subr.bf16.mxu0 %v3495_v34  ;;  %2131 = vmatprep.subr.bf16.mxu1 %v3497_v35  ;;  %v365_v33 = vld [vmem:[%s4030_s23 + $0x3d8] sm:$0xff]  ;;  %v3446_v34 = vcombine.low %v268_v21, %v300_v22  ;;  %v3448_v35 = vcombine.low %v269_v23, %v301_v24  ;;  %v2860_v21 = vunpack.c.0.s8 %v2859_v16 }
  0xc2   : > { %2120 = vmatprep.mubr.bf16.mxu0 %v3827_v0  ;;  %2161 = vmatprep.mubr.bf16.mxu1 %v3827_v0  ;;  %v3513_v37 = vcombine.high %v333_v32, %v365_v33 }
  0xc4   : > { %2091 = vmatpush1.bf16.msra.mxu0 %v3494_v40  ;;  %2132 = vmatpush1.bf16.msra.mxu1 %v3496_v41  ;;  %v271_v40 = vld [vmem:[%s4030_s23 + $0xe8] sm:$0xff] }
  0xc5   : > { %2170 = vmatprep.subr.bf16.mxu0 %v3435_v42  ;;  %2211 = vmatprep.subr.bf16.mxu1 %v3437_v43  ;;  %v303_v41 = vld [vmem:[%s4030_s23 + $0x1e8] sm:$0xff]  ;;  %v3510_v42 = vcombine.low %v332_v30, %v364_v31  ;;  %v3512_v43 = vcombine.low %v333_v32, %v365_v33 }
  0xc6   : > { %v3453_v45 = vcombine.high %v271_v40, %v303_v41 }
  0xc7   : > { %3540 = vmatmul.mubr.msk.bf16.vlgmr.msra.gmra.mrb[36].mxu0 %vm1346_vm0, %v4054_v27  ;;  %3541 = vmatmul.mubr.msk.bf16.vlgmr.msra.gmra.mrb[36].mxu1 %vm1346_vm0, %v4054_v27 }
  0xc8   : > { %2171 = vmatpush1.bf16.msra.mxu0 %v3434_v48  ;;  %2212 = vmatpush1.bf16.msra.mxu1 %v3436_v49  ;;  %v335_v48 = vld [vmem:[%s4030_s23 + $0x2e8] sm:$0xff] }
  0xc9   : > { %2172 = vmatprep.subr.bf16.mxu0 %v3499_v50  ;;  %2213 = vmatprep.subr.bf16.mxu1 %v3501_v51  ;;  %v367_v49 = vld [vmem:[%s4030_s23 + $0x3e8] sm:$0xff]  ;;  %v3450_v50 = vcombine.low %v270_v38, %v302_v39  ;;  %v3452_v51 = vcombine.low %v271_v40, %v303_v41 }
  0xca   : > { %2202 = vmatprep.mubr.bf16.mxu0 %v3827_v0  ;;  %2243 = vmatprep.mubr.bf16.mxu1 %v3827_v0  ;;  %v3517_v53 = vcombine.high %v335_v48, %v367_v49 }
  0xcc   : > { %2173 = vmatpush1.bf16.msra.mxu0 %v3498_v56  ;;  %2214 = vmatpush1.bf16.msra.mxu1 %v3500_v57  ;;  %v273_v56 = vld [vmem:[%s4030_s23 + $0xf8] sm:$0xff] }
  0xcd   : > { %2252 = vmatprep.subr.bf16.mxu0 %v3439_v58  ;;  %2293 = vmatprep.subr.bf16.mxu1 %v3441_v59  ;;  %v305_v57 = vld [vmem:[%s4030_s23 + $0x1f8] sm:$0xff]  ;;  %v3514_v58 = vcombine.low %v334_v46, %v366_v47  ;;  %v3516_v59 = vcombine.low %v335_v48, %v367_v49 }
  0xce   : > { %v3457_v61 = vcombine.high %v273_v56, %v305_v57 }
  0xcf   : > { %3542 = vmatmul.mubr.msk.bf16.vlgmr.msra.gmra.mrb[40].mxu0 %vm1346_vm0, %v4054_v27  ;;  %3543 = vmatmul.mubr.msk.bf16.vlgmr.msra.gmra.mrb[40].mxu1 %vm1346_vm0, %v4054_v27 }
  0xd0   : > { %2253 = vmatpush1.bf16.msra.mxu0 %v3438_v1  ;;  %2294 = vmatpush1.bf16.msra.mxu1 %v3440_v2  ;;  %v337_v1 = vld [vmem:[%s4030_s23 + $0x2f8] sm:$0xff] }
  0xd1   : > { %2254 = vmatprep.subr.bf16.mxu0 %v3503_v3  ;;  %2295 = vmatprep.subr.bf16.mxu1 %v3505_v4  ;;  %v369_v2 = vld [vmem:[%s4030_s23 + $0x3f8] sm:$0xff]  ;;  %v3454_v3 = vcombine.low %v272_v54, %v304_v55  ;;  %v3456_v4 = vcombine.low %v273_v56, %v305_v57 }
  0xd2   : > { %2284 = vmatprep.mubr.bf16.mxu0 %v3827_v0  ;;  %2325 = vmatprep.mubr.bf16.mxu1 %v3827_v0  ;;  %v3521_v6 = vcombine.high %v337_v1, %v369_v2  ;;  %v3520_v8 = vcombine.low %v337_v1, %v369_v2 }
  0xd4   : > { %2255 = vmatpush1.bf16.msra.mxu0 %v3502_v9  ;;  %2296 = vmatpush1.bf16.msra.mxu1 %v3504_v10  ;;  %v386_v9 = vlaneseq }
  0xd5   : > { %2334 = vmatprep.subr.bf16.mxu0 %v3443_v11  ;;  %2375 = vmatprep.subr.bf16.mxu1 %v3445_v12  ;;  %v370_v12 = vld [vmem:[%s4267_s27] sm:$0xff] }
  0xd6   : > { %v387_v10 = vshrl.u32 %v386_v9, 7 }
  0xd7   : > { %3544 = vmatmul.mubr.msk.bf16.vlgmr.msra.gmra.mrb[44].mxu0 %vm1346_vm0, %v4054_v27  ;;  %3545 = vmatmul.mubr.msk.bf16.vlgmr.msra.gmra.mrb[44].mxu1 %vm1346_vm0, %v4054_v27 }
  0xd8   : > { %2335 = vmatpush1.bf16.msra.mxu0 %v3442_v17  ;;  %2376 = vmatpush1.bf16.msra.mxu1 %v3444_v18  ;;  %v4263_v11 = vsub.s32 0, %v387_v10  ;;  %v4270_v13 = vsub.s32 2, %v387_v10  ;;  %v4274_v14 = vsub.s32 3, %v387_v10  ;;  %v4282_v31 = vsub.s32 6, %v387_v10 }
  0xd9   : > { %2336 = vmatprep.subr.bf16.mxu0 %v3507_v19  ;;  %2377 = vmatprep.subr.bf16.mxu1 %v3509_v20  ;;  %v4284_v32 = vsub.s32 5, %v387_v10  ;;  %v4288_v40 = vsub.s32 %v2860_v21, %v387_v10 }
  0xda   : > { %2366 = vmatprep.mubr.bf16.mxu0 %v3827_v0  ;;  %2407 = vmatprep.mubr.bf16.mxu1 %v3827_v0  ;;  %v397_v17 = vrot.slane %v370_v12, %v4270_v13  ;;  %v401_v19 = vrot.slane %v370_v12, %v4274_v14 }
  0xdb   : > { %v409_v46 = vrot.slane %v370_v12, %v4284_v32 }
  0xdc   : > { %2337 = vmatpush1.bf16.msra.mxu0 %v3506_v25  ;;  %2378 = vmatpush1.bf16.msra.mxu1 %v3508_v26  ;;  %v4280_v25 = vsub.s32 4, %v387_v10 }
  0xdd   : > { %2416 = vmatprep.subr.bf16.mxu0 %v3447_v28  ;;  %2457 = vmatprep.subr.bf16.mxu1 %v3449_v29 }
  0xdf   : > { %3546 = vmatmul.mubr.msk.bf16.vlgmr.msra.gmra.mrb[48].mxu0 %vm1346_vm0, %v4054_v27  ;;  %3547 = vmatmul.mubr.msk.bf16.vlgmr.msra.gmra.mrb[48].mxu1 %vm1346_vm0, %v4054_v27 }
  0xe0   : > { %2417 = vmatpush1.bf16.msra.mxu0 %v3446_v34  ;;  %2458 = vmatpush1.bf16.msra.mxu1 %v3448_v35 }
  0xe1   : > { %2418 = vmatprep.subr.bf16.mxu0 %v3511_v36  ;;  %2459 = vmatprep.subr.bf16.mxu1 %v3513_v37  ;;  %v4286_v37 = vsub.s32 7, %v387_v10 }
  0xe2   : > { %2448 = vmatprep.mubr.bf16.mxu0 %v3827_v0  ;;  %2489 = vmatprep.mubr.bf16.mxu1 %v3827_v0 }
  0xe3   : > { %v417_v48 = vrot.slane %v370_v12, %v4286_v37 }
  0xe4   : > { %2419 = vmatpush1.bf16.msra.mxu0 %v3510_v42  ;;  %2460 = vmatpush1.bf16.msra.mxu1 %v3512_v43  ;;  %v405_v43 = vrot.slane %v370_v12, %v4280_v25 }
  0xe5   : > { %2498 = vmatprep.subr.bf16.mxu0 %v3451_v44  ;;  %2539 = vmatprep.subr.bf16.mxu1 %v3453_v45  ;;  %v413_v45 = vrot.slane %v370_v12, %v4282_v31 }
  0xe7   : > { %3548 = vmatmul.mubr.msk.bf16.vlgmr.msra.gmra.mrb[52].mxu0 %vm1346_vm0, %v4054_v27  ;;  %3549 = vmatmul.mubr.msk.bf16.vlgmr.msra.gmra.mrb[52].mxu1 %vm1346_vm0, %v4054_v27 }
  0xe8   : > { %2499 = vmatpush1.bf16.msra.mxu0 %v3450_v50  ;;  %2540 = vmatpush1.bf16.msra.mxu1 %v3452_v51 }
  0xe9   : > { %2500 = vmatprep.subr.bf16.mxu0 %v3515_v52  ;;  %2541 = vmatprep.subr.bf16.mxu1 %v3517_v53 }
  0xea   : > { %2530 = vmatprep.mubr.bf16.mxu0 %v3827_v0  ;;  %2571 = vmatprep.mubr.bf16.mxu1 %v3827_v0 }
  0xec   : > { %2501 = vmatpush1.bf16.msra.mxu0 %v3514_v58  ;;  %2542 = vmatpush1.bf16.msra.mxu1 %v3516_v59  ;;  %v371_v59 = vld [vmem:[%s4267_s27 + $0x8] sm:$0xff] }
  0xed   : > { %2580 = vmatprep.subr.bf16.mxu0 %v3455_v60  ;;  %2621 = vmatprep.subr.bf16.mxu1 %v3457_v61 }
  0xef   : > { %3550 = vmatmul.mubr.msk.bf16.vlgmr.msra.gmra.mrb[56].mxu0 %vm1346_vm0, %v4054_v27  ;;  %3551 = vmatmul.mubr.msk.bf16.vlgmr.msra.gmra.mrb[56].mxu1 %vm1346_vm0, %v4054_v27 }
  0xf0   : > { %2581 = vmatpush1.bf16.msra.mxu0 %v3454_v3  ;;  %2622 = vmatpush1.bf16.msra.mxu1 %v3456_v4 }
  0xf1   : > { %2582 = vmatprep.subr.bf16.mxu0 %v3519_v5  ;;  %2623 = vmatprep.subr.bf16.mxu1 %v3521_v6  ;;  %v421_v6 = vrot.slane %v371_v59, %v4263_v11 }
  0xf2   : > { %2612 = vmatprep.mubr.bf16.mxu0 %v3827_v0  ;;  %2653 = vmatprep.mubr.bf16.mxu1 %v3827_v0  ;;  %v4272_v0 = vsub.s32 1, %v387_v10 }
  0xf4   : > { %2583 = vmatpush1.bf16.msra.mxu0 %v3518_v7  ;;  %2624 = vmatpush1.bf16.msra.mxu1 %v3520_v8  ;;  %v393_v18 = vrot.slane %v370_v12, %v4272_v0  ;;  %v429_v8 = vrot.slane %v371_v59, %v4270_v13  ;;  %v425_v9 = vrot.slane %v371_v59, %v4272_v0 }
  0xf7   : > { %3552 = vmatmul.mubr.msk.bf16.vlgmr.msra.gmra.mrb[60].mxu0 %vm1346_vm0, %v4054_v27  ;;  %3553 = vmatmul.mubr.msk.bf16.vlgmr.msra.gmra.mrb[60].mxu1 %vm1346_vm0, %v4054_v27  ;;  %v389_v27 = vrot.slane %v370_v12, %v4263_v11  ;;  %v433_v12 = vrot.slane %v371_v59, %v4274_v14 }
 0x152   : > { %v1384_v20 = vpop.f32.mrb[0].mxu0  ;;  %v1425_v23 = vpop.f32.mrb[0].mxu1 }
 0x153   : > { %v1385_v22 = vadd.f32 %v1384_v20, %v389_v27  ;;  %v1386_v24 = vpop.f32.mrb[1].mxu0  ;;  %v1426_v26 = vadd.f32 %v1425_v23, %v397_v17  ;;  %v1427_v29 = vpop.f32.mrb[1].mxu1 }
 0x154   : > { %v1387_v28 = vadd.f32 %v1386_v24, %v393_v18  ;;  %v1388_v30 = vpop.f32.mrb[2].mxu0  ;;  %v1428_v34 = vadd.f32 %v1427_v29, %v401_v19  ;;  %v1429_v35 = vpop.f32.mrb[2].mxu1 }
 0x155   : > { %v2662_v33 = vmax.f32 %v1385_v22, 0.0  ;;  %v1389_v36 = vpop.f32.mrb[3].mxu0  ;;  %v2664_v38 = vmax.f32 %v1426_v26, 0.0  ;;  %v1430_v41 = vpop.f32.mrb[3].mxu1 }
 0x156   : > { %v2663_v39 = vmax.f32 %v1387_v28, 0.0  ;;  %v2665_v42 = vmax.f32 %v1428_v34, 0.0  ;;  %v437_v41 = vrot.slane %v371_v59, %v4280_v25 }
 0x158   : > { %v3554_v44 = vpack.c.bf16 %v2663_v39, %v2662_v33  ;;  %v3555_v47 = vpack.c.bf16 %v2665_v42, %v2664_v38 }
 0x15a   : > { %v2864_v49 = vrot.slane %v3554_v44, %v4288_v40  ;;  %v1466_v50 = vpop.f32.mrb[4].mxu0  ;;  %v2871_v51 = vrot.slane %v3555_v47, %v4288_v40  ;;  %v1507_v53 = vpop.f32.mrb[4].mxu1  ;;  %v441_v44 = vrot.slane %v371_v59, %v4284_v32  ;;  %v449_v47 = vrot.slane %v371_v59, %v4286_v37 }
 0x15b   : > { %v1467_v52 = vadd.f32 %v1466_v50, %v405_v43  ;;  %v1468_v54 = vpop.f32.mrb[5].mxu0  ;;  %v1508_v55 = vadd.f32 %v1507_v53, %v413_v45  ;;  %v1509_v57 = vpop.f32.mrb[5].mxu1  ;;  %v445_v43 = vrot.slane %v371_v59, %v4282_v31 }
 0x15c   : > { %v1469_v56 = vadd.f32 %v1468_v54, %v409_v46  ;;  %v1470_v58 = vpop.f32.mrb[6].mxu0  ;;  %v2886_v60 = vcombine.low %v2864_v49, %v2871_v51  ;;  %v1510_v62 = vadd.f32 %v1509_v57, %v417_v48  ;;  %v1511_v63 = vpop.f32.mrb[6].mxu1 }
 0x15d   : > { %v2666_v61 = vmax.f32 %v1467_v52, 0.0  ;;  %v1471_v1 = vpop.f32.mrb[7].mxu0  ;;  %v2668_v2 = vmax.f32 %v1508_v55, 0.0  ;;  %v1512_v4 = vpop.f32.mrb[7].mxu1  ;;  %v372_v58 = vld [vmem:[%s4267_s27 + $0x10] sm:$0xff] }
 0x15e   : > { %v2667_v3 = vmax.f32 %v1469_v56, 0.0  ;;  %v2669_v5 = vmax.f32 %v1510_v62, 0.0  ;;  %v2894_v36 = vrot.slane %v2886_v60, %v4288_v40 }
 0x160   : > { %v3556_v7 = vpack.c.bf16 %v2667_v3, %v2666_v61  ;;  %v3557_v10 = vpack.c.bf16 %v2669_v5, %v2668_v2  ;;  %v453_v5 = vrot.slane %v372_v58, %v4263_v11 }
 0x162   : > { %v2878_v15 = vrot.slane %v3556_v7, %v4288_v40  ;;  %v1548_v16 = vpop.f32.mrb[8].mxu0  ;;  %v2885_v27 = vrot.slane %v3557_v10, %v4288_v40  ;;  %v1589_v18 = vpop.f32.mrb[8].mxu1  ;;  %v461_v7 = vrot.slane %v372_v58, %v4270_v13  ;;  %v465_v10 = vrot.slane %v372_v58, %v4274_v14 }
 0x163   : > { %v1549_v17 = vadd.f32 %v1548_v16, %v421_v6  ;;  %v1550_v19 = vpop.f32.mrb[9].mxu0  ;;  %v1590_v20 = vadd.f32 %v1589_v18, %v429_v8  ;;  %v1591_v22 = vpop.f32.mrb[9].mxu1  ;;  %v457_v8 = vrot.slane %v372_v58, %v4272_v0 }
 0x164   : > { %v1551_v21 = vadd.f32 %v1550_v19, %v425_v9  ;;  %v1552_v23 = vpop.f32.mrb[10].mxu0  ;;  %v2887_v24 = vcombine.low %v2878_v15, %v2885_v27  ;;  %v1592_v28 = vadd.f32 %v1591_v22, %v433_v12  ;;  %v1593_v29 = vpop.f32.mrb[10].mxu1 }
 0x165   : > { %v2670_v26 = vmax.f32 %v1549_v17, 0.0  ;;  %v1553_v30 = vpop.f32.mrb[11].mxu0  ;;  %v2672_v33 = vmax.f32 %v1590_v20, 0.0  ;;  %v1594_v35 = vpop.f32.mrb[11].mxu1 }
 0x166   : > { %v2671_v34 = vmax.f32 %v1551_v21, 0.0  ;;  %v2901_v38 = vrot.slane %v2887_v24, %v4288_v40  ;;  %v2673_v39 = vmax.f32 %v1592_v28, 0.0 }
 0x168   : > { %v3558_v42 = vpack.c.bf16 %v2671_v34, %v2670_v26  ;;  %v2902_v45 = vcombine.low %v2894_v36, %v2901_v38  ;;  %v3559_v46 = vpack.c.bf16 %v2673_v39, %v2672_v33  ;;  %v469_v39 = vrot.slane %v372_v58, %v4280_v25 }
 0x16a   : > { %v2913_v48 = vrot.slane %v3558_v42, %v4288_v40  ;;  %v1630_v49 = vpop.f32.mrb[12].mxu0  ;;  %3254 = vst [vmem:[%s4312_s4] sm:$0xff] %v2902_v45  ;;  %v2920_v50 = vrot.slane %v3559_v46, %v4288_v40  ;;  %v1671_v52 = vpop.f32.mrb[12].mxu1  ;;  %v477_v42 = vrot.slane %v372_v58, %v4282_v31  ;;  %v481_v46 = vrot.slane %v372_v58, %v4286_v37 }
 0x16b   : > { %v1631_v51 = vadd.f32 %v1630_v49, %v437_v41  ;;  %v1632_v53 = vpop.f32.mrb[13].mxu0  ;;  %v1672_v54 = vadd.f32 %v1671_v52, %v445_v43  ;;  %v1673_v56 = vpop.f32.mrb[13].mxu1  ;;  %v473_v43 = vrot.slane %v372_v58, %v4284_v32 }
 0x16c   : > { %v1633_v55 = vadd.f32 %v1632_v53, %v441_v44  ;;  %v1634_v57 = vpop.f32.mrb[14].mxu0  ;;  %v2935_v60 = vcombine.low %v2913_v48, %v2920_v50  ;;  %v1674_v61 = vadd.f32 %v1673_v56, %v449_v47  ;;  %v1675_v62 = vpop.f32.mrb[14].mxu1 }
 0x16d   : > { %v2674_v59 = vmax.f32 %v1631_v51, 0.0  ;;  %v1635_v63 = vpop.f32.mrb[15].mxu0  ;;  %v2676_v1 = vmax.f32 %v1672_v54, 0.0  ;;  %v1676_v3 = vpop.f32.mrb[15].mxu1  ;;  %v373_v57 = vld [vmem:[%s4267_s27 + $0x18] sm:$0xff] }
 0x16e   : > { %v2675_v2 = vmax.f32 %v1633_v55, 0.0  ;;  %v2677_v4 = vmax.f32 %v1674_v61, 0.0  ;;  %v2943_v35 = vrot.slane %v2935_v60, %v4288_v40 }
 0x170   : > { %v3560_v6 = vpack.c.bf16 %v2675_v2, %v2674_v59  ;;  %v3561_v9 = vpack.c.bf16 %v2677_v4, %v2676_v1  ;;  %v485_v4 = vrot.slane %v373_v57, %v4263_v11 }
 0x172   : > { %v2927_v12 = vrot.slane %v3560_v6, %v4288_v40  ;;  %v1712_v15 = vpop.f32.mrb[16].mxu0  ;;  %v2934_v16 = vrot.slane %v3561_v9, %v4288_v40  ;;  %v1753_v17 = vpop.f32.mrb[16].mxu1  ;;  %v493_v6 = vrot.slane %v373_v57, %v4270_v13  ;;  %v497_v9 = vrot.slane %v373_v57, %v4274_v14 }
 0x173   : > { %v1713_v27 = vadd.f32 %v1712_v15, %v453_v5  ;;  %v1714_v18 = vpop.f32.mrb[17].mxu0  ;;  %v1754_v19 = vadd.f32 %v1753_v17, %v461_v7  ;;  %v1755_v21 = vpop.f32.mrb[17].mxu1  ;;  %v489_v7 = vrot.slane %v373_v57, %v4272_v0 }
 0x174   : > { %v1715_v20 = vadd.f32 %v1714_v18, %v457_v8  ;;  %v1716_v22 = vpop.f32.mrb[18].mxu0  ;;  %v2936_v23 = vcombine.low %v2927_v12, %v2934_v16  ;;  %v1756_v26 = vadd.f32 %v1755_v21, %v465_v10  ;;  %v1757_v28 = vpop.f32.mrb[18].mxu1 }
 0x175   : > { %v2678_v24 = vmax.f32 %v1713_v27, 0.0  ;;  %v1717_v29 = vpop.f32.mrb[19].mxu0  ;;  %v2680_v30 = vmax.f32 %v1754_v19, 0.0  ;;  %v1758_v34 = vpop.f32.mrb[19].mxu1 }
 0x176   : > { %v2679_v33 = vmax.f32 %v1715_v20, 0.0  ;;  %v2950_v36 = vrot.slane %v2936_v23, %v4288_v40  ;;  %v2681_v38 = vmax.f32 %v1756_v26, 0.0 }
 0x178   : > { %v3562_v41 = vpack.c.bf16 %v2679_v33, %v2678_v24  ;;  %v2951_v44 = vcombine.low %v2943_v35, %v2950_v36  ;;  %v3563_v45 = vpack.c.bf16 %v2681_v38, %v2680_v30  ;;  %v501_v38 = vrot.slane %v373_v57, %v4280_v25 }
 0x17a   : > { %v2962_v47 = vrot.slane %v3562_v41, %v4288_v40  ;;  %v1794_v48 = vpop.f32.mrb[20].mxu0  ;;  %3255 = vst [vmem:[%s4312_s4 + $0x8] sm:$0xff] %v2951_v44  ;;  %v2969_v49 = vrot.slane %v3563_v45, %v4288_v40  ;;  %v1835_v51 = vpop.f32.mrb[20].mxu1  ;;  %v509_v41 = vrot.slane %v373_v57, %v4282_v31  ;;  %v513_v45 = vrot.slane %v373_v57, %v4286_v37 }
 0x17b   : > { %v1795_v50 = vadd.f32 %v1794_v48, %v469_v39  ;;  %v1796_v52 = vpop.f32.mrb[21].mxu0  ;;  %v1836_v53 = vadd.f32 %v1835_v51, %v477_v42  ;;  %v1837_v55 = vpop.f32.mrb[21].mxu1  ;;  %v505_v42 = vrot.slane %v373_v57, %v4284_v32 }
 0x17c   : > { %v1797_v54 = vadd.f32 %v1796_v52, %v473_v43  ;;  %v1798_v56 = vpop.f32.mrb[22].mxu0  ;;  %v2984_v60 = vcombine.low %v2962_v47, %v2969_v49  ;;  %v1838_v61 = vadd.f32 %v1837_v55, %v481_v46  ;;  %v1839_v62 = vpop.f32.mrb[22].mxu1 }
 0x17d   : > { %v2682_v59 = vmax.f32 %v1795_v50, 0.0  ;;  %v1799_v63 = vpop.f32.mrb[23].mxu0  ;;  %v2684_v58 = vmax.f32 %v1836_v53, 0.0  ;;  %v1840_v2 = vpop.f32.mrb[23].mxu1  ;;  %v374_v56 = vld [vmem:[%s4267_s27 + $0x20] sm:$0xff] }
 0x17e   : > { %v2683_v1 = vmax.f32 %v1797_v54, 0.0  ;;  %v2685_v3 = vmax.f32 %v1838_v61, 0.0  ;;  %v2992_v34 = vrot.slane %v2984_v60, %v4288_v40 }
 0x180   : > { %v3564_v5 = vpack.c.bf16 %v2683_v1, %v2682_v59  ;;  %v3565_v8 = vpack.c.bf16 %v2685_v3, %v2684_v58  ;;  %v517_v3 = vrot.slane %v374_v56, %v4263_v11 }
 0x182   : > { %v2976_v10 = vrot.slane %v3564_v5, %v4288_v40  ;;  %v1876_v12 = vpop.f32.mrb[24].mxu0  ;;  %v2983_v15 = vrot.slane %v3565_v8, %v4288_v40  ;;  %v1917_v27 = vpop.f32.mrb[24].mxu1  ;;  %v525_v5 = vrot.slane %v374_v56, %v4270_v13  ;;  %v529_v8 = vrot.slane %v374_v56, %v4274_v14 }
 0x183   : > { %v1877_v16 = vadd.f32 %v1876_v12, %v485_v4  ;;  %v1878_v17 = vpop.f32.mrb[25].mxu0  ;;  %v1918_v18 = vadd.f32 %v1917_v27, %v493_v6  ;;  %v1919_v20 = vpop.f32.mrb[25].mxu1  ;;  %v521_v6 = vrot.slane %v374_v56, %v4272_v0 }
 0x184   : > { %v1879_v19 = vadd.f32 %v1878_v17, %v489_v7  ;;  %v1880_v21 = vpop.f32.mrb[26].mxu0  ;;  %v2985_v22 = vcombine.low %v2976_v10, %v2983_v15  ;;  %v1920_v24 = vadd.f32 %v1919_v20, %v497_v9  ;;  %v1921_v26 = vpop.f32.mrb[26].mxu1 }
 0x185   : > { %v2686_v23 = vmax.f32 %v1877_v16, 0.0  ;;  %v1881_v28 = vpop.f32.mrb[27].mxu0  ;;  %v2688_v29 = vmax.f32 %v1918_v18, 0.0  ;;  %v1922_v33 = vpop.f32.mrb[27].mxu1 }
 0x186   : > { %v2687_v30 = vmax.f32 %v1879_v19, 0.0  ;;  %v2999_v35 = vrot.slane %v2985_v22, %v4288_v40  ;;  %v2689_v36 = vmax.f32 %v1920_v24, 0.0 }
 0x188   : > { %v3566_v39 = vpack.c.bf16 %v2687_v30, %v2686_v23  ;;  %v3000_v43 = vcombine.low %v2992_v34, %v2999_v35  ;;  %v3567_v44 = vpack.c.bf16 %v2689_v36, %v2688_v29  ;;  %v533_v36 = vrot.slane %v374_v56, %v4280_v25 }
 0x18a   : > { %v3011_v46 = vrot.slane %v3566_v39, %v4288_v40  ;;  %v1958_v47 = vpop.f32.mrb[28].mxu0  ;;  %3256 = vst [vmem:[%s4312_s4 + $0x10] sm:$0xff] %v3000_v43  ;;  %v3018_v48 = vrot.slane %v3567_v44, %v4288_v40  ;;  %v1999_v50 = vpop.f32.mrb[28].mxu1  ;;  %v541_v39 = vrot.slane %v374_v56, %v4282_v31  ;;  %v545_v44 = vrot.slane %v374_v56, %v4286_v37 }
 0x18b   : > { %v1959_v49 = vadd.f32 %v1958_v47, %v501_v38  ;;  %v1960_v51 = vpop.f32.mrb[29].mxu0  ;;  %v2000_v52 = vadd.f32 %v1999_v50, %v509_v41  ;;  %v2001_v54 = vpop.f32.mrb[29].mxu1  ;;  %v537_v41 = vrot.slane %v374_v56, %v4284_v32 }
 0x18c   : > { %v1961_v53 = vadd.f32 %v1960_v51, %v505_v42  ;;  %v1962_v55 = vpop.f32.mrb[30].mxu0  ;;  %v3033_v60 = vcombine.low %v3011_v46, %v3018_v48  ;;  %v2002_v61 = vadd.f32 %v2001_v54, %v513_v45  ;;  %v2003_v62 = vpop.f32.mrb[30].mxu1 }
 0x18d   : > { %v2690_v59 = vmax.f32 %v1959_v49, 0.0  ;;  %v1963_v63 = vpop.f32.mrb[31].mxu0  ;;  %v2692_v57 = vmax.f32 %v2000_v52, 0.0  ;;  %v2004_v1 = vpop.f32.mrb[31].mxu1  ;;  %v375_v55 = vld [vmem:[%s4267_s27 + $0x28] sm:$0xff] }
 0x18e   : > { %v2691_v58 = vmax.f32 %v1961_v53, 0.0  ;;  %v2693_v2 = vmax.f32 %v2002_v61, 0.0  ;;  %v3041_v33 = vrot.slane %v3033_v60, %v4288_v40 }
 0x190   : > { %v3568_v4 = vpack.c.bf16 %v2691_v58, %v2690_v59  ;;  %v3569_v7 = vpack.c.bf16 %v2693_v2, %v2692_v57  ;;  %v549_v2 = vrot.slane %v375_v55, %v4263_v11 }
 0x192   : > { %v3025_v9 = vrot.slane %v3568_v4, %v4288_v40  ;;  %v2040_v10 = vpop.f32.mrb[32].mxu0  ;;  %v3032_v12 = vrot.slane %v3569_v7, %v4288_v40  ;;  %v2081_v16 = vpop.f32.mrb[32].mxu1  ;;  %v557_v4 = vrot.slane %v375_v55, %v4270_v13  ;;  %v561_v7 = vrot.slane %v375_v55, %v4274_v14 }
 0x193   : > { %v2041_v15 = vadd.f32 %v2040_v10, %v517_v3  ;;  %v2042_v27 = vpop.f32.mrb[33].mxu0  ;;  %v2082_v17 = vadd.f32 %v2081_v16, %v525_v5  ;;  %v2083_v19 = vpop.f32.mrb[33].mxu1  ;;  %v553_v5 = vrot.slane %v375_v55, %v4272_v0 }
 0x194   : > { %v2043_v18 = vadd.f32 %v2042_v27, %v521_v6  ;;  %v2044_v20 = vpop.f32.mrb[34].mxu0  ;;  %v3034_v21 = vcombine.low %v3025_v9, %v3032_v12  ;;  %v2084_v23 = vadd.f32 %v2083_v19, %v529_v8  ;;  %v2085_v24 = vpop.f32.mrb[34].mxu1 }
 0x195   : > { %v2694_v22 = vmax.f32 %v2041_v15, 0.0  ;;  %v2045_v26 = vpop.f32.mrb[35].mxu0  ;;  %v2696_v28 = vmax.f32 %v2082_v17, 0.0  ;;  %v2086_v30 = vpop.f32.mrb[35].mxu1 }
 0x196   : > { %v2695_v29 = vmax.f32 %v2043_v18, 0.0  ;;  %v3048_v34 = vrot.slane %v3034_v21, %v4288_v40  ;;  %v2697_v35 = vmax.f32 %v2084_v23, 0.0 }
 0x198   : > { %v3570_v38 = vpack.c.bf16 %v2695_v29, %v2694_v22  ;;  %v3049_v42 = vcombine.low %v3041_v33, %v3048_v34  ;;  %v3571_v43 = vpack.c.bf16 %v2697_v35, %v2696_v28  ;;  %v565_v35 = vrot.slane %v375_v55, %v4280_v25 }
 0x19a   : > { %v3060_v45 = vrot.slane %v3570_v38, %v4288_v40  ;;  %v2122_v46 = vpop.f32.mrb[36].mxu0  ;;  %3257 = vst [vmem:[%s4312_s4 + $0x18] sm:$0xff] %v3049_v42  ;;  %v3067_v47 = vrot.slane %v3571_v43, %v4288_v40  ;;  %v2163_v49 = vpop.f32.mrb[36].mxu1  ;;  %v573_v38 = vrot.slane %v375_v55, %v4282_v31  ;;  %v577_v43 = vrot.slane %v375_v55, %v4286_v37 }
 0x19b   : > { %v2123_v48 = vadd.f32 %v2122_v46, %v533_v36  ;;  %v2124_v50 = vpop.f32.mrb[37].mxu0  ;;  %v2164_v51 = vadd.f32 %v2163_v49, %v541_v39  ;;  %v2165_v53 = vpop.f32.mrb[37].mxu1  ;;  %v569_v39 = vrot.slane %v375_v55, %v4284_v32 }
 0x19c   : > { %v2125_v52 = vadd.f32 %v2124_v50, %v537_v41  ;;  %v2126_v54 = vpop.f32.mrb[38].mxu0  ;;  %v3082_v60 = vcombine.low %v3060_v45, %v3067_v47  ;;  %v2166_v61 = vadd.f32 %v2165_v53, %v545_v44  ;;  %v2167_v62 = vpop.f32.mrb[38].mxu1 }
 0x19d   : > { %v2698_v59 = vmax.f32 %v2123_v48, 0.0  ;;  %v2127_v63 = vpop.f32.mrb[39].mxu0  ;;  %v2700_v56 = vmax.f32 %v2164_v51, 0.0  ;;  %v2168_v58 = vpop.f32.mrb[39].mxu1  ;;  %v376_v54 = vld [vmem:[%s4267_s27 + $0x30] sm:$0xff] }
 0x19e   : > { %v2699_v57 = vmax.f32 %v2125_v52, 0.0  ;;  %v2701_v1 = vmax.f32 %v2166_v61, 0.0  ;;  %v3090_v30 = vrot.slane %v3082_v60, %v4288_v40 }
 0x1a0   : > { %v3572_v3 = vpack.c.bf16 %v2699_v57, %v2698_v59  ;;  %v3573_v6 = vpack.c.bf16 %v2701_v1, %v2700_v56  ;;  %v581_v1 = vrot.slane %v376_v54, %v4263_v11 }
 0x1a2   : > { %v3074_v8 = vrot.slane %v3572_v3, %v4288_v40  ;;  %v2204_v9 = vpop.f32.mrb[40].mxu0  ;;  %v3081_v10 = vrot.slane %v3573_v6, %v4288_v40  ;;  %v2245_v15 = vpop.f32.mrb[40].mxu1  ;;  %v589_v3 = vrot.slane %v376_v54, %v4270_v13  ;;  %v593_v6 = vrot.slane %v376_v54, %v4274_v14 }
 0x1a3   : > { %v2205_v12 = vadd.f32 %v2204_v9, %v549_v2  ;;  %v2206_v16 = vpop.f32.mrb[41].mxu0  ;;  %v2246_v27 = vadd.f32 %v2245_v15, %v557_v4  ;;  %v2247_v18 = vpop.f32.mrb[41].mxu1  ;;  %v585_v4 = vrot.slane %v376_v54, %v4272_v0 }
 0x1a4   : > { %v2207_v17 = vadd.f32 %v2206_v16, %v553_v5  ;;  %v2208_v19 = vpop.f32.mrb[42].mxu0  ;;  %v3083_v20 = vcombine.low %v3074_v8, %v3081_v10  ;;  %v2248_v22 = vadd.f32 %v2247_v18, %v561_v7  ;;  %v2249_v23 = vpop.f32.mrb[42].mxu1 }
 0x1a5   : > { %v2702_v21 = vmax.f32 %v2205_v12, 0.0  ;;  %v2209_v24 = vpop.f32.mrb[43].mxu0  ;;  %v2704_v26 = vmax.f32 %v2246_v27, 0.0  ;;  %v2250_v29 = vpop.f32.mrb[43].mxu1 }
 0x1a6   : > { %v2703_v28 = vmax.f32 %v2207_v17, 0.0  ;;  %v3097_v33 = vrot.slane %v3083_v20, %v4288_v40  ;;  %v2705_v34 = vmax.f32 %v2248_v22, 0.0 }
 0x1a8   : > { %v3574_v36 = vpack.c.bf16 %v2703_v28, %v2702_v21  ;;  %v3098_v41 = vcombine.low %v3090_v30, %v3097_v33  ;;  %v3575_v42 = vpack.c.bf16 %v2705_v34, %v2704_v26  ;;  %v597_v34 = vrot.slane %v376_v54, %v4280_v25 }
 0x1aa   : > { %v3109_v44 = vrot.slane %v3574_v36, %v4288_v40  ;;  %v2286_v45 = vpop.f32.mrb[44].mxu0  ;;  %3258 = vst [vmem:[%s4312_s4 + $0x20] sm:$0xff] %v3098_v41  ;;  %v3116_v46 = vrot.slane %v3575_v42, %v4288_v40  ;;  %v2327_v48 = vpop.f32.mrb[44].mxu1  ;;  %v605_v36 = vrot.slane %v376_v54, %v4282_v31  ;;  %v609_v42 = vrot.slane %v376_v54, %v4286_v37 }
 0x1ab   : > { %v2287_v47 = vadd.f32 %v2286_v45, %v565_v35  ;;  %v2288_v49 = vpop.f32.mrb[45].mxu0  ;;  %v2328_v50 = vadd.f32 %v2327_v48, %v573_v38  ;;  %v2329_v52 = vpop.f32.mrb[45].mxu1  ;;  %v601_v38 = vrot.slane %v376_v54, %v4284_v32 }
 0x1ac   : > { %v2289_v51 = vadd.f32 %v2288_v49, %v569_v39  ;;  %v2290_v53 = vpop.f32.mrb[46].mxu0  ;;  %v3131_v60 = vcombine.low %v3109_v44, %v3116_v46  ;;  %v2330_v61 = vadd.f32 %v2329_v52, %v577_v43  ;;  %v2331_v62 = vpop.f32.mrb[46].mxu1 }
 0x1ad   : > { %v2706_v59 = vmax.f32 %v2287_v47, 0.0  ;;  %v2291_v63 = vpop.f32.mrb[47].mxu0  ;;  %v2708_v55 = vmax.f32 %v2328_v50, 0.0  ;;  %v2332_v57 = vpop.f32.mrb[47].mxu1  ;;  %v377_v53 = vld [vmem:[%s4267_s27 + $0x38] sm:$0xff] }
 0x1ae   : > { %v2707_v56 = vmax.f32 %v2289_v51, 0.0  ;;  %v2709_v58 = vmax.f32 %v2330_v61, 0.0  ;;  %v3139_v29 = vrot.slane %v3131_v60, %v4288_v40 }
 0x1b0   : > { %v3576_v2 = vpack.c.bf16 %v2707_v56, %v2706_v59  ;;  %v3577_v5 = vpack.c.bf16 %v2709_v58, %v2708_v55  ;;  %v613_v58 = vrot.slane %v377_v53, %v4263_v11 }
 0x1b2   : > { %v3123_v7 = vrot.slane %v3576_v2, %v4288_v40  ;;  %v2368_v8 = vpop.f32.mrb[48].mxu0  ;;  %v3130_v9 = vrot.slane %v3577_v5, %v4288_v40  ;;  %v2409_v12 = vpop.f32.mrb[48].mxu1  ;;  %v621_v2 = vrot.slane %v377_v53, %v4270_v13  ;;  %v625_v5 = vrot.slane %v377_v53, %v4274_v14 }
 0x1b3   : > { %v2369_v10 = vadd.f32 %v2368_v8, %v581_v1  ;;  %v2370_v15 = vpop.f32.mrb[49].mxu0  ;;  %v2410_v16 = vadd.f32 %v2409_v12, %v589_v3  ;;  %v2411_v17 = vpop.f32.mrb[49].mxu1  ;;  %v617_v3 = vrot.slane %v377_v53, %v4272_v0 }
 0x1b4   : > { %v2371_v27 = vadd.f32 %v2370_v15, %v585_v4  ;;  %v2372_v18 = vpop.f32.mrb[50].mxu0  ;;  %v3132_v19 = vcombine.low %v3123_v7, %v3130_v9  ;;  %v2412_v21 = vadd.f32 %v2411_v17, %v593_v6  ;;  %v2413_v22 = vpop.f32.mrb[50].mxu1 }
 0x1b5   : > { %v2710_v20 = vmax.f32 %v2369_v10, 0.0  ;;  %v2373_v23 = vpop.f32.mrb[51].mxu0  ;;  %v2712_v24 = vmax.f32 %v2410_v16, 0.0  ;;  %v2414_v28 = vpop.f32.mrb[51].mxu1 }
 0x1b6   : > { %v2711_v26 = vmax.f32 %v2371_v27, 0.0  ;;  %v3146_v30 = vrot.slane %v3132_v19, %v4288_v40  ;;  %v2713_v33 = vmax.f32 %v2412_v21, 0.0 }
 0x1b8   : > { %v3578_v35 = vpack.c.bf16 %v2711_v26, %v2710_v20  ;;  %v3147_v39 = vcombine.low %v3139_v29, %v3146_v30  ;;  %v3579_v41 = vpack.c.bf16 %v2713_v33, %v2712_v24  ;;  %v629_v26 = vrot.slane %v377_v53, %v4280_v25 }
 0x1b9   : > { %v637_v29 = vrot.slane %v377_v53, %v4282_v31  ;;  %v633_v30 = vrot.slane %v377_v53, %v4284_v32 }
 0x1ba   : > { %v3158_v43 = vrot.slane %v3578_v35, %v4288_v40  ;;  %v2450_v44 = vpop.f32.mrb[52].mxu0  ;;  %3259 = vst [vmem:[%s4312_s4 + $0x28] sm:$0xff] %v3147_v39  ;;  %v3165_v45 = vrot.slane %v3579_v41, %v4288_v40  ;;  %v2491_v47 = vpop.f32.mrb[52].mxu1  ;;  %v641_v35 = vrot.slane %v377_v53, %v4286_v37 }
 0x1bb   : > { %v2451_v46 = vadd.f32 %v2450_v44, %v597_v34  ;;  %v2452_v48 = vpop.f32.mrb[53].mxu0  ;;  %v2492_v49 = vadd.f32 %v2491_v47, %v605_v36  ;;  %v2493_v51 = vpop.f32.mrb[53].mxu1 }
 0x1bc   : > { %v2453_v50 = vadd.f32 %v2452_v48, %v601_v38  ;;  %v2454_v52 = vpop.f32.mrb[54].mxu0  ;;  %v3180_v60 = vcombine.low %v3158_v43, %v3165_v45  ;;  %v2494_v61 = vadd.f32 %v2493_v51, %v609_v42  ;;  %v2495_v62 = vpop.f32.mrb[54].mxu1 }
 0x1bd   : > { %v2714_v59 = vmax.f32 %v2451_v46, 0.0  ;;  %v2455_v63 = vpop.f32.mrb[55].mxu0  ;;  %v2716_v54 = vmax.f32 %v2492_v49, 0.0  ;;  %v2496_v56 = vpop.f32.mrb[55].mxu1 }
 0x1be   : > { %v2715_v55 = vmax.f32 %v2453_v50, 0.0  ;;  %v2717_v57 = vmax.f32 %v2494_v61, 0.0  ;;  %v3188_v22 = vrot.slane %v3180_v60, %v4288_v40 }
 0x1c0   : > { %v3580_v1 = vpack.c.bf16 %v2715_v55, %v2714_v59  ;;  %v3581_v4 = vpack.c.bf16 %v2717_v57, %v2716_v54 }
 0x1c2   : > { %v3172_v6 = vrot.slane %v3580_v1, %v4288_v40  ;;  %v2532_v7 = vpop.f32.mrb[56].mxu0  ;;  %v3179_v8 = vrot.slane %v3581_v4, %v4288_v40  ;;  %v2573_v10 = vpop.f32.mrb[56].mxu1 }
 0x1c3   : > { %v2533_v9 = vadd.f32 %v2532_v7, %v613_v58  ;;  %v2534_v12 = vpop.f32.mrb[57].mxu0  ;;  %v2574_v15 = vadd.f32 %v2573_v10, %v621_v2  ;;  %v2575_v27 = vpop.f32.mrb[57].mxu1 }
 0x1c4   : > { %v2535_v16 = vadd.f32 %v2534_v12, %v617_v3  ;;  %v2536_v11 = vpop.f32.mrb[58].mxu0  ;;  %v3181_v17 = vcombine.low %v3172_v6, %v3179_v8  ;;  %v2576_v13 = vadd.f32 %v2575_v27, %v625_v5  ;;  %v2577_v19 = vpop.f32.mrb[58].mxu1 }
 0x1c5   : > { %v2718_v18 = vmax.f32 %v2533_v9, 0.0  ;;  %v2537_v0 = vpop.f32.mrb[59].mxu0  ;;  %v2720_v20 = vmax.f32 %v2574_v15, 0.0  ;;  %v2578_v21 = vpop.f32.mrb[59].mxu1 }
 0x1c6   : > { %v2719_v14 = vmax.f32 %v2535_v16, 0.0  ;;  %v3195_v23 = vrot.slane %v3181_v17, %v4288_v40  ;;  %v2721_v24 = vmax.f32 %v2576_v13, 0.0 }
 0x1c8   : > { %v3582_v28 = vpack.c.bf16 %v2719_v14, %v2718_v18  ;;  %v3196_v33 = vcombine.low %v3188_v22, %v3195_v23  ;;  %v3583_v34 = vpack.c.bf16 %v2721_v24, %v2720_v20 }
 0x1ca   : > { %v3207_v36 = vrot.slane %v3582_v28, %v4288_v40  ;;  %v2614_v38 = vpop.f32.mrb[60].mxu0  ;;  %3260 = vst [vmem:[%s4312_s4 + $0x30] sm:$0xff] %v3196_v33  ;;  %v3214_v39 = vrot.slane %v3583_v34, %v4288_v40  ;;  %v2655_v42 = vpop.f32.mrb[60].mxu1 }
 0x1cb   : > { %v2615_v41 = vadd.f32 %v2614_v38, %v629_v26  ;;  %v2616_v43 = vpop.f32.mrb[61].mxu0  ;;  %v2656_v44 = vadd.f32 %v2655_v42, %v637_v29  ;;  %v2657_v45 = vpop.f32.mrb[61].mxu1 }
 0x1cc   : > { %v2617_v25 = vadd.f32 %v2616_v43, %v633_v30  ;;  %v2618_v31 = vpop.f32.mrb[62].mxu0  ;;  %v3229_v32 = vcombine.low %v3207_v36, %v3214_v39  ;;  %v2658_v47 = vadd.f32 %v2657_v45, %v641_v35  ;;  %v2659_v48 = vpop.f32.mrb[62].mxu1 }
 0x1cd   : > { %v2722_v46 = vmax.f32 %v2615_v41, 0.0  ;;  %v2619_v37 = vpop.f32.mrb[63].mxu0  ;;  %v2724_v49 = vmax.f32 %v2656_v44, 0.0  ;;  %v2660_v51 = vpop.f32.mrb[63].mxu1 }
 0x1ce   : > { %v2723_v50 = vmax.f32 %v2617_v25, 0.0  ;;  %v2725_v52 = vmax.f32 %v2658_v47, 0.0  ;;  %v3237_v63 = vrot.slane %v3229_v32, %v4288_v40 }
 0x1d0   : > { %v3584_v53 = vpack.c.bf16 %v2723_v50, %v2722_v46  ;;  %v3585_v60 = vpack.c.bf16 %v2725_v52, %v2724_v49 }
 0x1d2   : > { %v3221_v59 = vrot.slane %v3584_v53, %v4288_v40  ;;  %v3228_v61 = vrot.slane %v3585_v60, %v4288_v40 }
 0x1d4   : > { %v3230_v62 = vcombine.low %v3221_v59, %v3228_v61 }
 0x1d6   : > { %v3244_v54 = vrot.slane %v3230_v62, %v4288_v40 }
 0x1d8   : > { %v3245_v55 = vcombine.low %v3237_v63, %v3244_v54 }
 0x1da   : > { %3261 = vst [vmem:[%s4312_s4 + $0x38] sm:$0xff] %v3245_v55 }
 0x1db   : > { %3762 = shalt.err (!%p3759_p1)
}
 0x1dc   : > { %s3763_s17 = scalar_lea.hbm %s4421_s11, 1024  ;;  %s3767_s29 = scalar_lea.hbm %s4468_s3, 4096 }
 0x1dd   : > { %p3764_p5 = scmp.ne.s32.totalorder %s4421_s11, %s3763_s17  ;;  %p3768_p6 = scmp.lt.u32.totalorder %s4421_s11, %s4468_s3 }
 0x1de   : > { %p3769_p8 = scmp.lt.u32.totalorder %s3767_s29, %s3763_s17  ;;  %p3771_p11 = scmp.lt.u32.totalorder %s3763_s17, %s4421_s11 }
 0x1df   : > { %p3765_p4 = pnand %p3764_p5, %p4489_p3 }
 0x1e0   : > { %p3770_p7 = por %p3769_p8, %p3768_p6 }
 0x1e1   : > { %p3766_p2 = pneg %p3765_p4 }
 0x1e2   : > { %p3772_p0 = por %p3771_p11, %p3770_p7 }
 0x1e4   : > { %p3773_p10 = pnand %p3772_p0, %p3766_p2 }
 0x1e6   : > { %3776 = shalt.err (!%p3773_p10)
}
 0x1e7   : > { %3602 = dma.vmem_to_hbm [thread:$0]  (%p4489_p3), %s4423_s20, 1024, %s4421_s11, %s3263_s7  }
 0x1e8 PF: > { %p3622_p12 = scmp.ge.s32.totalorder %s3819_s15, 2  ;;  %s3289_s30 = sand.u32 1, %s3807_s12  }
 0x1e9   : > { %p4490_p13 = scmp.ne.s32.totalorder %s4479_s28, 0  ;;  %s3290_s27 = scalar_lea.sflag [#allocation4], %s3289_s30 }
 0x1eb   : > { %p3616_p9 = pnand %p3622_p12, %p4490_p13 }
 0x1ed   : > { %3802 = dma.done.wait (!%p3616_p9), %s3290_s27, 1024  }
 0x1ee   : > { %3804 = vsyncadd (!%p3616_p9), %s3290_s27, 4294966272  ;;  %p17_p1 = scmp.ge.s32.totalorder %s3871_s16, 6   ;;  %s4491_s12 = smov %s3811_s13 }
 0x1ef   : > { %s4492_s13 = smov %s3815_s14  ;;  %s4493_s14 = smov %s3881_s19 }
 0x1f0   : > { %s4494_s15 = smov %s3871_s16  ;;  %19 = sbr.rel (!%p17_p1) target bundleno = 6 (0x6), region = 93 }
 0x1f7   :  { %3295 = vsyncpa [#allocation3], 1 }
 0x1f8   :  { %3297 = vsyncpa [#allocation3 + $0x1], 1 }
 0x1f9   :  { %3298 = vsyncpa [#allocation6], 1 }
 0x1fa   :  { %3300 = vsyncpa [#allocation6 + $0x1], 1 }
 0x1fb   :  { %3301 = vsyncpa [#allocation4], 1 }
 0x1fc   :  { %3303 = vsyncpa [#allocation4 + $0x1], 1 }

</bundles_post_ra>
